<compile_context>
chip_gen: v7x
topology: tpu7x:2x2x1
jax: 0.10.0
libtpu: 0.0.40
codegen_flags: <defaults>
</compile_context>

<pallas_src>
import jax
import jax.numpy as jnp
import numpy as np
from jax.experimental import pallas as pl
from jax.experimental.pallas import tpu as pltpu


# ---------------------------------------------------------------------------
# Tuning knobs (generation-aware guidance):
#   v5e/v6e (128 MiB VMEM): _ROW_TILE_CAP/_K_TILE_CAP may be raised (e.g. 512 / 4096) to
#       amortize the ~0.35 us per-grid-step overhead; vmem_limit_bytes scales with them.
#   v7x (64 MiB VMEM per TensorCore, ~2.3x HBM BW): keep tiles moderate and instead set
#       _A_PIPELINE_MODE = pl.Buffered(3) for deeper buffering of the streamed adjacency.
# ---------------------------------------------------------------------------
_ROW_TILE_CAP = 256          # destination-row tile cap (stage 2)
_K_TILE_CAP = 2048           # contraction (source-node) tile cap (stage 2)
_STAGE1_ROW_CAP = 512        # row tile cap for the fused linear (stage 1)
_A_PIPELINE_MODE = None      # e.g. pl.Buffered(3) on v7x
_VMEM_LIMIT_CAP = 48 << 20   # stay under v7x's 64 MiB per-TC VMEM


def _round_up(n, m):
    return ((n + m - 1) // m) * m


def _pick_tile(n_pad, cap):
    """Largest multiple of 128 that divides n_pad and is <= cap (n_pad % 128 == 0)."""
    best = 128
    t = 128
    lim = min(cap, n_pad)
    while t <= lim:
        if n_pad % t == 0:
            best = t
        t += 128
    return best


def _compiler_params(dimension_semantics, vmem_bytes_needed):
    """CompilerParams with a scoped-VMEM limit derived from the buffer math (2x headroom),
    clamped so it is >= every generation's default and < v7x's 64 MiB per-TC VMEM."""
    return pltpu.CompilerParams(
        dimension_semantics=dimension_semantics,
        vmem_limit_bytes=int(min(_VMEM_LIMIT_CAP,
                                 max(32 << 20, 2 * vmem_bytes_needed))))


def prepare_adjacency(adj_stack, block=128):
    """One-time graph preprocessing (hoisted off the forward path, like module __init__).

    Converts the stacked per-division adjacency A[d, v, u] (any numeric/bool dtype with
    exactly-0/1 entries) to int8 and zero-pads both node axes to a multiple of `block`.
    int8 is lossless for 0/1 edges and minimizes HBM traffic of the dominant operand.
    """
    # TODO(synk): weighted / pre-normalized adjacency would need a float carrier dtype.
    num_div, n, n2 = adj_stack.shape
    assert n == n2, "adjacency must be square per division"
    n_pad = _round_up(n, block)
    a = (adj_stack != 0).astype(jnp.int8)
    if n_pad != n:
        a = jnp.pad(a, ((0, 0), (0, n_pad - n), (0, n_pad - n)))
    return a


# ---------------------------- stage 1: fused linear -----------------------------------
def _linear_kernel(x_ref, w_ref, norm_ref, wh_ref):
    """Wh_all tile = (X_tile @ W_all) * source-node norm, stored bf16.

    bf16 operands take the full-rate MXU path; accumulation and the norm multiply are f32.
    """
    x16 = x_ref[...].astype(jnp.bfloat16)
    wh = jnp.dot(x16, w_ref[...], preferred_element_type=jnp.float32)
    wh_ref[...] = (wh * norm_ref[...]).astype(wh_ref.dtype)


# ------------------------ stage 2: K-tiled aggregation --------------------------------
def _aggregate_kernel(a_ref, wh_ref, norm_ref, o_ref, acc_ref):
    """One grid step = (row tile of destination nodes) x (K tile of source nodes).

    acc[:, d*out_f:(d+1)*out_f] += A_d[row tile, K tile] @ Wh_d[K tile]
    and on the last K step:  o = ReLU(dest_norm * acc)   (merge='cat').
    """
    k = pl.program_id(1)

    @pl.when(k == 0)
    def _init():
        acc_ref[...] = jnp.zeros_like(acc_ref)

    num_div = a_ref.shape[0]
    out_f = acc_ref.shape[-1] // num_div
    parts = []
    for d in range(num_div):                            # static unroll; D is small
        a_d = a_ref[d].astype(jnp.bfloat16)             # int8 -> bf16 (VPU, hides under DMA)
        wh_d = wh_ref[:, d * out_f:(d + 1) * out_f]     # static slice of the Ref, no full load
        parts.append(jnp.dot(a_d, wh_d, preferred_element_type=jnp.float32))
    acc_ref[...] += jnp.concatenate(parts, axis=-1)     # lane-dense (TM, D*out_f) update

    @pl.when(k == pl.num_programs(1) - 1)
    def _finish():
        o_ref[...] = jnp.maximum(acc_ref[...] * norm_ref[...], 0.0).astype(o_ref.dtype)


def geomgcn_single_channel_forward(x, w_stack, adj_int8, norm, merge="cat"):
    """x: (N, in_f) f32, w_stack: (D, in_f, out_f) f32 (transposed torch Linear weights),
    adj_int8: (D, N_pad, N_pad) int8 from prepare_adjacency (A[d, v, u]), norm: (N, 1) f32.
    Returns (N, D*out_f) f32 for merge='cat'."""
    if merge != "cat":
        # TODO(synk): merge='mean' needs dest-norm + ReLU applied after the cross-division
        # mean (ReLU(mean) != mean(ReLU)); only 'cat' is implemented.
        raise NotImplementedError("only merge='cat' is implemented")

    num_div, in_f, out_f = w_stack.shape
    n_nodes = x.shape[0]
    feat = num_div * out_f
    n_pad = adj_int8.shape[1]
    assert adj_int8.shape == (num_div, n_pad, n_pad) and n_pad >= n_nodes
    assert n_pad % 128 == 0, "run prepare_adjacency() first"

    # Pad the small per-node operands. Padded X/norm rows are zeros and padded adjacency
    # rows/cols are zeros, so padding never leaks into real outputs (sliced off at the end).
    if n_pad != n_nodes:
        x = jnp.pad(x, ((0, n_pad - n_nodes), (0, 0)))
        norm = jnp.pad(norm, ((0, n_pad - n_nodes), (0, 0)))

    # Fused, lane-dense weight: column block d of W_all is W_d. bf16 weights feed the
    # full-rate MXU; Wh is truncated to bf16 afterwards anyway (tiny one-time cast).
    w_all = jnp.transpose(w_stack, (1, 0, 2)).reshape(in_f, feat).astype(jnp.bfloat16)

    # ---- stage 1: Wh_all = (X @ W_all) * source-node norm, stored bf16 ----
    tl = _pick_tile(n_pad, _STAGE1_ROW_CAP)
    s1_vmem = (2 * tl * in_f * 4 + 2 * in_f * feat * 2 + 2 * tl * 4 + 2 * tl * feat * 2)
    wh_all = pl.pallas_call(
        _linear_kernel,
        out_shape=jax.ShapeDtypeStruct((n_pad, feat), jnp.bfloat16),
        grid_spec=pltpu.PrefetchScalarGridSpec(
            num_scalar_prefetch=0,
            grid=(n_pad // tl,),
            in_specs=[
                pl.BlockSpec((tl, in_f), lambda i: (i, 0)),     # X row tile
                pl.BlockSpec((in_f, feat), lambda i: (0, 0)),   # W_all (resident, tiny)
                pl.BlockSpec((tl, 1), lambda i: (i, 0)),        # source-node norm
            ],
            out_specs=pl.BlockSpec((tl, feat), lambda i: (i, 0)),
        ),
        compiler_params=_compiler_params(("parallel",), s1_vmem),
        cost_estimate=pl.CostEstimate(
            flops=2 * n_pad * in_f * feat,
            transcendentals=0,
            bytes_accessed=(4 * n_pad * in_f + 2 * in_f * feat
                            + 4 * n_pad + 2 * n_pad * feat)),
    )(x, w_all, norm)

    # ---- stage 2: K-tiled aggregation + dest-node norm + ReLU, lane-dense out ----
    # TM chosen so the "parallel" row axis has >=2 steps whenever possible (v7x megacore).
    tm = _pick_tile(n_pad, min(_ROW_TILE_CAP, max(128, n_pad // 2)))
    tk = _pick_tile(n_pad, _K_TILE_CAP)
    s2_vmem = (2 * num_div * tm * tk * 1      # A double buffer (int8)
               + 2 * tk * feat * 2            # Wh double buffer (bf16)
               + 2 * tm * 4                   # dest-node norm
               + 2 * tm * feat * 4            # output double buffer (f32)
               + tm * feat * 4)               # f32 accumulator scratch

    a_spec_kwargs = {}
    if _A_PIPELINE_MODE is not None:          # deeper A buffering (v7x knob)
        a_spec_kwargs["pipeline_mode"] = _A_PIPELINE_MODE

    out = pl.pallas_call(
        _aggregate_kernel,
        out_shape=jax.ShapeDtypeStruct((n_pad, feat), jnp.float32),
        grid_spec=pltpu.PrefetchScalarGridSpec(
            num_scalar_prefetch=0,
            grid=(n_pad // tm, n_pad // tk),
            in_specs=[
                pl.BlockSpec((num_div, tm, tk), lambda i, k: (0, i, k),
                             **a_spec_kwargs),                        # A tile (streamed int8)
                pl.BlockSpec((tk, feat), lambda i, k: (k, 0)),        # Wh K tile (bf16)
                pl.BlockSpec((tm, 1), lambda i, k: (i, 0)),           # dest-node norm
            ],
            out_specs=pl.BlockSpec((tm, feat), lambda i, k: (i, 0)),
            scratch_shapes=[pltpu.VMEM((tm, feat), jnp.float32)],
        ),
        compiler_params=_compiler_params(("parallel", "arbitrary"), s2_vmem),
        cost_estimate=pl.CostEstimate(
            flops=2 * num_div * n_pad * n_pad * out_f,
            transcendentals=0,
            bytes_accessed=(num_div * n_pad * n_pad                    # A (int8)
                            + (n_pad // tm) * n_pad * feat * 2         # Wh re-streamed / row tile
                            + 4 * n_pad + 4 * n_pad * feat)),
    )(adj_int8, wh_all, norm)

    return out[:n_nodes]


def _reference_forward(x, w_stack, adj_int8, norm):
    """Plain-JAX f32 reference mirroring the PyTorch/DGL semantics (merge='cat', ReLU)."""
    adj = adj_int8.astype(jnp.float32)
    outs = []
    for d in range(w_stack.shape[0]):
        wh = jnp.dot(x, w_stack[d], precision=jax.lax.Precision.HIGHEST) * norm
        outs.append(jnp.dot(adj[d], wh, precision=jax.lax.Precision.HIGHEST))
    h_new = jnp.concatenate(outs, axis=-1)
    return jnp.maximum(h_new * norm, 0.0)


def _build_params_and_graph(key, n_nodes, in_feats, out_feats, num_divisions):
    k_w, k_edge, k_div, k_x = jax.random.split(key, 4)

    # Xavier-uniform init (torch Linear weight is (out, in); we store the transposed
    # (in, out) matrix — the uniform distribution is symmetric, so this is equivalent).
    bound = float(np.sqrt(6.0 / (in_feats + out_feats)))
    w_stack = jax.random.uniform(
        k_w, (num_divisions, in_feats, out_feats),
        minval=-bound, maxval=bound, dtype=jnp.float32)

    # Deterministic random directed graph: edge mask + per-edge division assignment.
    # Adjacency built directly as int8 0/1 (no f32 adjacency ever materialized).
    edge_mask = jax.random.uniform(k_edge, (n_nodes, n_nodes)) < 0.3
    edge_mask = jnp.logical_and(edge_mask, ~jnp.eye(n_nodes, dtype=bool))   # no self loops
    div_assign = jax.random.randint(k_div, (n_nodes, n_nodes), 0, num_divisions)
    adj_stack = jnp.stack(
        [jnp.logical_and(edge_mask, div_assign == d) for d in range(num_divisions)],
        axis=0).astype(jnp.int8)                                            # (D, N, N), A[d, v, u]

    # Node norm (as precomputed in DGL ndata['norm']): 1/sqrt(1 + in-degree), shape (N, 1).
    in_deg = jnp.sum(adj_stack.astype(jnp.int32), axis=(0, 2)).astype(jnp.float32)
    norm = (1.0 / jnp.sqrt(1.0 + in_deg)).reshape(n_nodes, 1)

    x = jax.random.normal(k_x, (n_nodes, in_feats), dtype=jnp.float32)
    return x, w_stack, adj_stack, norm


if __name__ == "__main__":
    key = jax.random.PRNGKey(0)
    N, IN_FEATS, OUT_FEATS, NUM_DIVISIONS = 256, 64, 32, 4   # D*out_f = 128 (lane-dense)

    x, w_stack, adj_i8, norm = _build_params_and_graph(
        key, N, IN_FEATS, OUT_FEATS, NUM_DIVISIONS)

    # One-time graph preprocessing (hoisted off the per-call forward path).
    adj_prepared = prepare_adjacency(adj_i8)

    fwd = jax.jit(geomgcn_single_channel_forward, static_argnames=("merge",))
    out = fwd(x, w_stack, adj_prepared, norm)
    out = jax.block_until_ready(out)

    ref = _reference_forward(x, w_stack, adj_i8, norm)
    assert out.shape == (N, NUM_DIVISIONS * OUT_FEATS)
    # int8 adjacency is exact (0/1 edges); bf16 X/W operands and bf16 Wh storage each
    # contribute ~0.4% relative error (f32 accumulation), hence the loosened tolerance.
    np.testing.assert_allclose(np.asarray(out), np.asarray(ref), rtol=5e-2, atol=1e-2)

    print("KERNEL_OK")
</pallas_src>

<mosaic_0001>
module attributes {stable_mosaic.version = 11 : i64} {
  func.func @_linear_kernel(%arg0: i32, %arg1: memref<256x64xf32, #tpu.memory_space<vmem>>, %arg2: memref<64x128xbf16, #tpu.memory_space<vmem>>, %arg3: memref<256x1xf32, #tpu.memory_space<vmem>>, %arg4: memref<256x128xbf16, #tpu.memory_space<vmem>>) attributes {dimension_semantics = [#tpu.dimension_semantics<parallel>], iteration_bounds = array<i64: 1>, scalar_prefetch = 0 : i64, scratch_operands = 0 : i64, tpu.core_type = #tpu.core_type<tc>, window_params = [{transform_indices = @transform_0, window_bounds = array<i64: 256, 64>}, {pipeline_mode = #tpu.pipeline_mode<synchronous>, transform_indices = @transform_1, window_bounds = array<i64: 64, 128>}, {transform_indices = @transform_2, window_bounds = array<i64: 256, 1>}, {transform_indices = @transform_3, window_bounds = array<i64: 256, 128>}]} {
    %c0 = arith.constant 0 : index
    %c0_0 = arith.constant 0 : index
    %0 = vector.load %arg1[%c0, %c0_0] : memref<256x64xf32, #tpu.memory_space<vmem>>, vector<256x64xf32>
    %1 = arith.truncf %0 : vector<256x64xf32> to vector<256x64xbf16>
    %c0_1 = arith.constant 0 : index
    %c0_2 = arith.constant 0 : index
    %2 = vector.load %arg2[%c0_1, %c0_2] : memref<64x128xbf16, #tpu.memory_space<vmem>>, vector<64x128xbf16>
    %cst = arith.constant dense<0.000000e+00> : vector<256x128xf32>
    %3 = tpu.matmul %1, %2, %cst {dimension_numbers = #tpu.dot_dimension_numbers<[1], [0], [0], [1], [0, 0, 1, 1], [], []>} : vector<256x64xbf16>, vector<64x128xbf16>, vector<256x128xf32> -> vector<256x128xf32>
    %c0_3 = arith.constant 0 : index
    %c0_4 = arith.constant 0 : index
    %4 = vector.load %arg3[%c0_3, %c0_4] : memref<256x1xf32, #tpu.memory_space<vmem>>, vector<256x1xf32>
    %5 = vector.broadcast %4 : vector<256x1xf32> to vector<256x128xf32>
    %6 = arith.mulf %3, %5 : vector<256x128xf32>
    %7 = arith.truncf %6 : vector<256x128xf32> to vector<256x128xbf16>
    %c0_5 = arith.constant 0 : index
    %c0_6 = arith.constant 0 : index
    %8 = vector.load %arg4[%c0_5, %c0_6] : memref<256x128xbf16, #tpu.memory_space<vmem>>, vector<256x128xbf16>
    tpu.vector_store %arg4[%c0_5, %c0_6], %7 {strides = array<i32>} : memref<256x128xbf16, #tpu.memory_space<vmem>>, vector<256x128xbf16>,
    return
  }
  func.func @transform_0(%arg0: i32) -> (i32, i32) {
    %c0_i32 = arith.constant 0 : i32
    %c0_i32_0 = arith.constant 0 : i32
    return %arg0, %c0_i32 : i32, i32
  }
  func.func @transform_1(%arg0: i32) -> (i32, i32) {
    %c0_i32 = arith.constant 0 : i32
    %c0_i32_0 = arith.constant 0 : i32
    %c0_i32_1 = arith.constant 0 : i32
    return %c0_i32, %c0_i32_0 : i32, i32
  }
  func.func @transform_2(%arg0: i32) -> (i32, i32) {
    %c0_i32 = arith.constant 0 : i32
    %c0_i32_0 = arith.constant 0 : i32
    return %arg0, %c0_i32 : i32, i32
  }
  func.func @transform_3(%arg0: i32) -> (i32, i32) {
    %c0_i32 = arith.constant 0 : i32
    %c0_i32_0 = arith.constant 0 : i32
    return %arg0, %c0_i32 : i32, i32
  }
}

module attributes {stable_mosaic.version = 11 : i64} {
  func.func @_aggregate_kernel(%arg0: i32, %arg1: i32, %arg2: memref<4x128x256xi8, #tpu.memory_space<vmem>>, %arg3: memref<256x128xbf16, #tpu.memory_space<vmem>>, %arg4: memref<128x1xf32, #tpu.memory_space<vmem>>, %arg5: memref<128x128xf32, #tpu.memory_space<vmem>>, %arg6: memref<128x128xf32, #tpu.memory_space<vmem>>) attributes {dimension_semantics = [#tpu.dimension_semantics<parallel>, #tpu.dimension_semantics<arbitrary>], iteration_bounds = array<i64: 2, 1>, scalar_prefetch = 0 : i64, scratch_operands = 1 : i64, tpu.core_type = #tpu.core_type<tc>, window_params = [{transform_indices = @transform_0, window_bounds = array<i64: 4, 128, 256>}, {transform_indices = @transform_1, window_bounds = array<i64: 256, 128>}, {transform_indices = @transform_2, window_bounds = array<i64: 128, 1>}, {transform_indices = @transform_3, window_bounds = array<i64: 128, 128>}]} {
    %c0_i32 = arith.constant 0 : i32
    %0 = arith.cmpi eq, %arg1, %c0_i32 : i32
    %1 = arith.extui %0 : i1 to i32
    %c0_i32_0 = arith.constant 0 : i32
    %2 = arith.cmpi ne, %1, %c0_i32_0 : i32
    scf.if %2 {
      %cst_23 = arith.constant 0.000000e+00 : f32
      %30 = vector.broadcast %cst_23 : f32 to vector<128x128xf32>
      %c0_24 = arith.constant 0 : index
      %c0_25 = arith.constant 0 : index
      %31 = vector.load %arg6[%c0_24, %c0_25] : memref<128x128xf32, #tpu.memory_space<vmem>>, vector<128x128xf32>
      tpu.vector_store %arg6[%c0_24, %c0_25], %30 {strides = array<i32>} : memref<128x128xf32, #tpu.memory_space<vmem>>, vector<128x128xf32>,
    } else {
    }
    %c0 = arith.constant 0 : index
    %c0_1 = arith.constant 0 : index
    %c0_2 = arith.constant 0 : index
    %3 = vector.load %arg2[%c0, %c0_1, %c0_2] : memref<4x128x256xi8, #tpu.memory_space<vmem>>, vector<1x128x256xi8>
    %4 = vector.shape_cast %3 : vector<1x128x256xi8> to vector<128x256xi8>
    %5 = arith.sitofp %4 : vector<128x256xi8> to vector<128x256xbf16>
    %c0_3 = arith.constant 0 : index
    %c0_4 = arith.constant 0 : index
    %6 = vector.load %arg3[%c0_3, %c0_4] : memref<256x128xbf16, #tpu.memory_space<vmem>>, vector<256x32xbf16>
    %cst = arith.constant dense<0.000000e+00> : vector<128x32xf32>
    %7 = tpu.matmul %5, %6, %cst {dimension_numbers = #tpu.dot_dimension_numbers<[1], [0], [0], [1], [0, 0, 1, 1], [], []>} : vector<128x256xbf16>, vector<256x32xbf16>, vector<128x32xf32> -> vector<128x32xf32>
    %c1 = arith.constant 1 : index
    %c0_5 = arith.constant 0 : index
    %c0_6 = arith.constant 0 : index
    %8 = vector.load %arg2[%c1, %c0_5, %c0_6] : memref<4x128x256xi8, #tpu.memory_space<vmem>>, vector<1x128x256xi8>
    %9 = vector.shape_cast %8 : vector<1x128x256xi8> to vector<128x256xi8>
    %10 = arith.sitofp %9 : vector<128x256xi8> to vector<128x256xbf16>
    %c0_7 = arith.constant 0 : index
    %c32 = arith.constant 32 : index
    %11 = vector.load %arg3[%c0_7, %c32] : memref<256x128xbf16, #tpu.memory_space<vmem>>, vector<256x32xbf16>
    %cst_8 = arith.constant dense<0.000000e+00> : vector<128x32xf32>
    %12 = tpu.matmul %10, %11, %cst_8 {dimension_numbers = #tpu.dot_dimension_numbers<[1], [0], [0], [1], [0, 0, 1, 1], [], []>} : vector<128x256xbf16>, vector<256x32xbf16>, vector<128x32xf32> -> vector<128x32xf32>
    %c2 = arith.constant 2 : index
    %c0_9 = arith.constant 0 : index
    %c0_10 = arith.constant 0 : index
    %13 = vector.load %arg2[%c2, %c0_9, %c0_10] : memref<4x128x256xi8, #tpu.memory_space<vmem>>, vector<1x128x256xi8>
    %14 = vector.shape_cast %13 : vector<1x128x256xi8> to vector<128x256xi8>
    %15 = arith.sitofp %14 : vector<128x256xi8> to vector<128x256xbf16>
    %c0_11 = arith.constant 0 : index
    %c64 = arith.constant 64 : index
    %16 = vector.load %arg3[%c0_11, %c64] : memref<256x128xbf16, #tpu.memory_space<vmem>>, vector<256x32xbf16>
    %cst_12 = arith.constant dense<0.000000e+00> : vector<128x32xf32>
    %17 = tpu.matmul %15, %16, %cst_12 {dimension_numbers = #tpu.dot_dimension_numbers<[1], [0], [0], [1], [0, 0, 1, 1], [], []>} : vector<128x256xbf16>, vector<256x32xbf16>, vector<128x32xf32> -> vector<128x32xf32>
    %c3 = arith.constant 3 : index
    %c0_13 = arith.constant 0 : index
    %c0_14 = arith.constant 0 : index
    %18 = vector.load %arg2[%c3, %c0_13, %c0_14] : memref<4x128x256xi8, #tpu.memory_space<vmem>>, vector<1x128x256xi8>
    %19 = vector.shape_cast %18 : vector<1x128x256xi8> to vector<128x256xi8>
    %20 = arith.sitofp %19 : vector<128x256xi8> to vector<128x256xbf16>
    %c0_15 = arith.constant 0 : index
    %c96 = arith.constant 96 : index
    %21 = vector.load %arg3[%c0_15, %c96] : memref<256x128xbf16, #tpu.memory_space<vmem>>, vector<256x32xbf16>
    %cst_16 = arith.constant dense<0.000000e+00> : vector<128x32xf32>
    %22 = tpu.matmul %20, %21, %cst_16 {dimension_numbers = #tpu.dot_dimension_numbers<[1], [0], [0], [1], [0, 0, 1, 1], [], []>} : vector<128x256xbf16>, vector<256x32xbf16>, vector<128x32xf32> -> vector<128x32xf32>
    %c0_17 = arith.constant 0 : index
    %c0_18 = arith.constant 0 : index
    %23 = vector.load %arg6[%c0_17, %c0_18] : memref<128x128xf32, #tpu.memory_space<vmem>>, vector<128x128xf32>
    %24 = tpu.concatenate %7, %12, %17, %22 in 1 : vector<128x32xf32>, vector<128x32xf32>, vector<128x32xf32>, vector<128x32xf32> -> vector<128x128xf32>
    %25 = arith.addf %23, %24 : vector<128x128xf32>
    %c0_19 = arith.constant 0 : index
    %c0_20 = arith.constant 0 : index
    %26 = vector.load %arg6[%c0_19, %c0_20] : memref<128x128xf32, #tpu.memory_space<vmem>>, vector<128x128xf32>
    tpu.vector_store %arg6[%c0_19, %c0_20], %25 {strides = array<i32>} : memref<128x128xf32, #tpu.memory_space<vmem>>, vector<128x128xf32>,
    %c0_i32_21 = arith.constant 0 : i32
    %27 = arith.cmpi eq, %arg1, %c0_i32_21 : i32
    %28 = arith.extui %27 : i1 to i32
    %c0_i32_22 = arith.constant 0 : i32
    %29 = arith.cmpi ne, %28, %c0_i32_22 : i32
    scf.if %29 {
      %c0_23 = arith.constant 0 : index
      %c0_24 = arith.constant 0 : index
      %30 = vector.load %arg6[%c0_23, %c0_24] : memref<128x128xf32, #tpu.memory_space<vmem>>, vector<128x128xf32>
      %c0_25 = arith.constant 0 : index
      %c0_26 = arith.constant 0 : index
      %31 = vector.load %arg4[%c0_25, %c0_26] : memref<128x1xf32, #tpu.memory_space<vmem>>, vector<128x1xf32>
      %32 = vector.broadcast %31 : vector<128x1xf32> to vector<128x128xf32>
      %33 = arith.mulf %30, %32 : vector<128x128xf32>
      %cst_27 = arith.constant 0.000000e+00 : f32
      %34 = vector.broadcast %cst_27 : f32 to vector<128x128xf32>
      %35 = arith.maximumf %33, %34 : vector<128x128xf32>
      %c0_28 = arith.constant 0 : index
      %c0_29 = arith.constant 0 : index
      %36 = vector.load %arg5[%c0_28, %c0_29] : memref<128x128xf32, #tpu.memory_space<vmem>>, vector<128x128xf32>
      tpu.vector_store %arg5[%c0_28, %c0_29], %35 {strides = array<i32>} : memref<128x128xf32, #tpu.memory_space<vmem>>, vector<128x128xf32>,
    } else {
    }
    return
  }
  func.func @transform_0(%arg0: i32, %arg1: i32) -> (i32, i32, i32) {
    %c0_i32 = arith.constant 0 : i32
    %c0_i32_0 = arith.constant 0 : i32
    return %c0_i32, %arg0, %arg1 : i32, i32, i32
  }
  func.func @transform_1(%arg0: i32, %arg1: i32) -> (i32, i32) {
    %c0_i32 = arith.constant 0 : i32
    %c0_i32_0 = arith.constant 0 : i32
    return %arg1, %c0_i32 : i32, i32
  }
  func.func @transform_2(%arg0: i32, %arg1: i32) -> (i32, i32) {
    %c0_i32 = arith.constant 0 : i32
    %c0_i32_0 = arith.constant 0 : i32
    return %arg0, %c0_i32 : i32, i32
  }
  func.func @transform_3(%arg0: i32, %arg1: i32) -> (i32, i32) {
    %c0_i32 = arith.constant 0 : i32
    %c0_i32_0 = arith.constant 0 : i32
    return %arg0, %c0_i32 : i32, i32
  }
}

</mosaic_0001>

<bundles_post_ra>
// kernel: geomgcn_single_channel_forward.2
= control target key start
LH: loop header
LB: loop body
LE: loop exit
PB: predicated region body
PF: predicated region fallthrough
CT: control target
= control target key end

     0   :  { %v947_v1 = vmov 0   ;;  %vm95_vm0 = vcmask 523264   ;;  %s1269_s1 = inlined_call_operand.vmem [shape: bf16[64,128], index: 1, kind: input, shape index: {}]   ;;  %s1270_s2 = inlined_call_operand.vmem [shape: f32[256,1], index: 2, kind: input, shape index: {}]   ;;  %s1271_s0 = inlined_call_operand.vmem [shape: f32[256,64], index: 0, kind: input, shape index: {}]   ;;  %s1272_s3 = inlined_call_operand.vmem [shape: bf16[256,128], index: 3, kind: output, shape index: {}]  }
   0x1   :  { %v943_v0 = vld [vmem:[%s1269_s1] sm:$0xff]   ;;  %942 = vset.pattern.permute.xlu1 %v947_v1  ;;  %941 = vset.pattern.permute.xlu0 %v947_v1  ;;  %v944_v2 = vld [vmem:[%s1269_s1 + $0x8] sm:$0xff]   ;;  %v307_v3 = vld [vmem:[%s1270_s2 + $0x10] sm:$0xff] }
   0x2   :  { %892 = vmatprep.subr.bf16.mxu0 %v943_v0  ;;  %932 = vmatprep.subr.bf16.mxu1 %v943_v0  ;;  %v305_v4 = vld [vmem:[%s1270_s2] sm:$0xff]  ;;  %v945_v5 = vld [vmem:[%s1269_s1 + $0x10] sm:$0xff]   ;;  %v308_v6 = vld [vmem:[%s1270_s2 + $0x18] sm:$0xff] }
   0x3   :  { %893 = vmatpush3.bf16.msra.mxu0 %v943_v0  ;;  %936 = vmatpush3.bf16.msra.mxu1 %v943_v0  ;;  %v306_v7 = vld [vmem:[%s1270_s2 + $0x8] sm:$0xff]  ;;  %v15_v8 = vld [vmem:[%s1271_s0] sm:$0xff]  ;;  %v946_v13 = vld [vmem:[%s1269_s1 + $0x18] sm:$0xff]  }
   0x4   :  { %894 = vmatprep.subr.bf16.mxu0 %v944_v2  ;;  %933 = vmatprep.subr.bf16.mxu1 %v944_v2  ;;  %v16_v9 = vld [vmem:[%s1271_s0 + $0x8] sm:$0xff]  ;;  %v31_v10 = vld [vmem:[%s1271_s0 + $0x80] sm:$0xff]  ;;  %v17_v17 = vld [vmem:[%s1271_s0 + $0x10] sm:$0xff] }
   0x5   :  { %349 = vperm.xlu1 %942, %v307_v3   ;;  %339 = vperm.xlu0 %941, %v305_v4   ;;  %v47_v11 = vpack.c.bf16 %v16_v9, %v15_v8  ;;  %v32_v12 = vld [vmem:[%s1271_s0 + $0x88] sm:$0xff]  ;;  %v309_v16 = vld [vmem:[%s1270_s2 + $0x20] sm:$0xff]  ;;  %v18_v18 = vld [vmem:[%s1271_s0 + $0x18] sm:$0xff] }
   0x6   :  { %v55_v14 = vpack.c.bf16 %v32_v12, %v31_v10  ;;  %v310_v15 = vld [vmem:[%s1270_s2 + $0x28] sm:$0xff]  ;;  %v33_v19 = vld [vmem:[%s1271_s0 + $0x90] sm:$0xff]  ;;  %v34_v20 = vld [vmem:[%s1271_s0 + $0x98] sm:$0xff]  ;;  %v48_v25 = vpack.c.bf16 %v18_v18, %v17_v17 }
   0x7   :  { %895 = vmatpush3.bf16.msra.mxu0 %v944_v2  ;;  %937 = vmatpush3.bf16.msra.mxu1 %v944_v2  ;;  %v19_v21 = vld [vmem:[%s1271_s0 + $0x20] sm:$0xff]  ;;  %v20_v22 = vld [vmem:[%s1271_s0 + $0x28] sm:$0xff]  ;;  %v56_v26 = vpack.c.bf16 %v34_v20, %v33_v19  ;;  %v312_v27 = vld [vmem:[%s1270_s2 + $0x38] sm:$0xff] }
   0x8   :  { %896 = vmatprep.subr.bf16.mxu0 %v945_v5  ;;  %934 = vmatprep.subr.bf16.mxu1 %v945_v5  ;;  %v35_v23 = vld [vmem:[%s1271_s0 + $0xa0] sm:$0xff]  ;;  %v36_v24 = vld [vmem:[%s1271_s0 + $0xa8] sm:$0xff]  ;;  %v311_v28 = vld [vmem:[%s1270_s2 + $0x30] sm:$0xff]  ;;  %v49_v29 = vpack.c.bf16 %v20_v22, %v19_v21 }
   0x9   :  { %354 = vperm.xlu1 %942, %v308_v6   ;;  %344 = vperm.xlu0 %941, %v306_v7   ;;  %v57_v30 = vpack.c.bf16 %v36_v24, %v35_v23  ;;  %v314_v31 = vld [vmem:[%s1270_s2 + $0x48] sm:$0xff]  ;;  %v313_v32 = vld [vmem:[%s1270_s2 + $0x40] sm:$0xff]  ;;  %v21_v33 = vld [vmem:[%s1271_s0 + $0x30] sm:$0xff] }
   0xa   :  { %900 = vmatprep.mubr.msk.bf16.mxu0 %vm95_vm0, %v47_v11  ;;  %916 = vmatprep.mubr.msk.bf16.mxu1 %vm95_vm0, %v55_v14  ;;  %v22_v34 = vld [vmem:[%s1271_s0 + $0x38] sm:$0xff]  ;;  %v37_v35 = vld [vmem:[%s1271_s0 + $0xb0] sm:$0xff]  ;;  %v23_v37 = vld [vmem:[%s1271_s0 + $0x40] sm:$0xff] }
   0xb   :  { %897 = vmatpush3.bf16.msra.mxu0 %v945_v5  ;;  %938 = vmatpush3.bf16.msra.mxu1 %v945_v5  ;;  %v38_v36 = vld [vmem:[%s1271_s0 + $0xb8] sm:$0xff]  ;;  %v24_v38 = vld [vmem:[%s1271_s0 + $0x48] sm:$0xff]  ;;  %v39_v39 = vld [vmem:[%s1271_s0 + $0xc0] sm:$0xff]  ;;  %v50_v41 = vpack.c.bf16 %v22_v34, %v21_v33 }
   0xc   :  { %898 = vmatprep.subr.bf16.mxu0 %v946_v13  ;;  %935 = vmatprep.subr.bf16.mxu1 %v946_v13  ;;  %v40_v40 = vld [vmem:[%s1271_s0 + $0xc8] sm:$0xff]  ;;  %v58_v42 = vpack.c.bf16 %v38_v36, %v37_v35  ;;  %v316_v43 = vld [vmem:[%s1270_s2 + $0x58] sm:$0xff]  ;;  %v315_v44 = vld [vmem:[%s1270_s2 + $0x50] sm:$0xff]  ;;  %v51_v45 = vpack.c.bf16 %v24_v38, %v23_v37 }
   0xd   :  { %364 = vperm.xlu1 %942, %v310_v15   ;;  %359 = vperm.xlu0 %941, %v309_v16   ;;  %v59_v46 = vpack.c.bf16 %v40_v40, %v39_v39  ;;  %v318_v47 = vld [vmem:[%s1270_s2 + $0x68] sm:$0xff]  ;;  %v317_v48 = vld [vmem:[%s1270_s2 + $0x60] sm:$0xff]  ;;  %v25_v49 = vld [vmem:[%s1271_s0 + $0x50] sm:$0xff] }
   0xe   :  { %v26_v50 = vld [vmem:[%s1271_s0 + $0x58] sm:$0xff]  ;;  %v41_v51 = vld [vmem:[%s1271_s0 + $0xd0] sm:$0xff]  ;;  %v27_v53 = vld [vmem:[%s1271_s0 + $0x60] sm:$0xff] }
   0xf   :  { %899 = vmatpush3.bf16.msra.mxu0 %v946_v13  ;;  %939 = vmatpush3.bf16.msra.mxu1 %v946_v13  ;;  %v42_v52 = vld [vmem:[%s1271_s0 + $0xd8] sm:$0xff]  ;;  %v28_v54 = vld [vmem:[%s1271_s0 + $0x68] sm:$0xff]  ;;  %v43_v55 = vld [vmem:[%s1271_s0 + $0xe0] sm:$0xff]  ;;  %v52_v57 = vpack.c.bf16 %v26_v50, %v25_v49 }
  0x10   :  { %v44_v56 = vld [vmem:[%s1271_s0 + $0xe8] sm:$0xff]  ;;  %v60_v58 = vpack.c.bf16 %v42_v52, %v41_v51  ;;  %v320_v59 = vld [vmem:[%s1270_s2 + $0x78] sm:$0xff]  ;;  %v319_v60 = vld [vmem:[%s1270_s2 + $0x70] sm:$0xff]  ;;  %v53_v61 = vpack.c.bf16 %v28_v54, %v27_v53 }
  0x11   :  { %374 = vperm.xlu1 %942, %v312_v27   ;;  %369 = vperm.xlu0 %941, %v311_v28   ;;  %v61_v62 = vpack.c.bf16 %v44_v56, %v43_v55  ;;  %v322_v63 = vld [vmem:[%s1270_s2 + $0x88] sm:$0xff]  ;;  %v321_v0 = vld [vmem:[%s1270_s2 + $0x80] sm:$0xff]  ;;  %v29_v1 = vld [vmem:[%s1271_s0 + $0x70] sm:$0xff] }
  0x12   :  { %901 = vmatmul.mubr.msk.bf16.vlgmr.msra.gmra.mrb[0].mxu0 %vm95_vm0, %v48_v25  ;;  %917 = vmatmul.mubr.msk.bf16.vlgmr.msra.gmra.mrb[0].mxu1 %vm95_vm0, %v56_v26  ;;  %v30_v2 = vld [vmem:[%s1271_s0 + $0x78] sm:$0xff]  ;;  %v45_v3 = vld [vmem:[%s1271_s0 + $0xf0] sm:$0xff]  ;;  %v326_v9 = vld [vmem:[%s1270_s2 + $0xa8] sm:$0xff] }
  0x13   :  { %904 = vmatprep.mubr.msk.bf16.mxu0 %vm95_vm0, %v49_v29  ;;  %920 = vmatprep.mubr.msk.bf16.mxu1 %vm95_vm0, %v57_v30  ;;  %v46_v4 = vld [vmem:[%s1271_s0 + $0xf8] sm:$0xff]  ;;  %v54_v5 = vpack.c.bf16 %v30_v2, %v29_v1  ;;  %v323_v8 = vld [vmem:[%s1270_s2 + $0x90] sm:$0xff]  ;;  %v325_v10 = vld [vmem:[%s1270_s2 + $0xa0] sm:$0xff] }
  0x14   :  { %v62_v6 = vpack.c.bf16 %v46_v4, %v45_v3  ;;  %v324_v7 = vld [vmem:[%s1270_s2 + $0x98] sm:$0xff]  ;;  %v327_v12 = vld [vmem:[%s1270_s2 + $0xb0] sm:$0xff]  ;;  %v330_v13 = vld [vmem:[%s1270_s2 + $0xc8] sm:$0xff] }
  0x15   :  { %384 = vperm.xlu1 %942, %v314_v31   ;;  %379 = vperm.xlu0 %941, %v313_v32   ;;  %v328_v11 = vld [vmem:[%s1270_s2 + $0xb8] sm:$0xff]  ;;  %v329_v14 = vld [vmem:[%s1270_s2 + $0xc0] sm:$0xff]  ;;  %v331_v16 = vld [vmem:[%s1270_s2 + $0xd0] sm:$0xff] }
  0x16   :  { %v332_v15 = vld [vmem:[%s1270_s2 + $0xd8] sm:$0xff]  ;;  %v334_v17 = vld [vmem:[%s1270_s2 + $0xe8] sm:$0xff]  ;;  %v333_v18 = vld [vmem:[%s1270_s2 + $0xe0] sm:$0xff] }
  0x17   :  { %v336_v19 = vld [vmem:[%s1270_s2 + $0xf8] sm:$0xff]  ;;  %v335_v20 = vld [vmem:[%s1270_s2 + $0xf0] sm:$0xff] }
  0x19   :  { %394 = vperm.xlu1 %942, %v316_v43   ;;  %389 = vperm.xlu0 %941, %v315_v44  }
  0x1a   :  { %905 = vmatmul.mubr.msk.bf16.gmra.mrb[4].mxu0 %vm95_vm0, %v50_v41  ;;  %921 = vmatmul.mubr.msk.bf16.gmra.mrb[4].mxu1 %vm95_vm0, %v58_v42 }
  0x1b   :  { %908 = vmatprep.mubr.msk.bf16.mxu0 %vm95_vm0, %v51_v45  ;;  %924 = vmatprep.mubr.msk.bf16.mxu1 %vm95_vm0, %v59_v46 }
  0x1d   :  { %404 = vperm.xlu1 %942, %v318_v47   ;;  %399 = vperm.xlu0 %941, %v317_v48  }
  0x21   :  { %414 = vperm.xlu1 %942, %v320_v59   ;;  %409 = vperm.xlu0 %941, %v319_v60  }
  0x22   :  { %909 = vmatmul.mubr.msk.bf16.gmra.mrb[8].mxu0 %vm95_vm0, %v52_v57  ;;  %925 = vmatmul.mubr.msk.bf16.gmra.mrb[8].mxu1 %vm95_vm0, %v60_v58 }
  0x23   :  { %912 = vmatprep.mubr.msk.bf16.mxu0 %vm95_vm0, %v53_v61  ;;  %928 = vmatprep.mubr.msk.bf16.mxu1 %vm95_vm0, %v61_v62 }
  0x25   :  { %424 = vperm.xlu1 %942, %v322_v63   ;;  %419 = vperm.xlu0 %941, %v321_v0  }
  0x29   :  { %434 = vperm.xlu1 %942, %v324_v7   ;;  %429 = vperm.xlu0 %941, %v323_v8  }
  0x2a   :  { %913 = vmatmul.mubr.msk.bf16.gmra.mrb[12].mxu0 %vm95_vm0, %v54_v5  ;;  %929 = vmatmul.mubr.msk.bf16.gmra.mrb[12].mxu1 %vm95_vm0, %v62_v6 }
  0x2d   :  { %444 = vperm.xlu1 %942, %v326_v9   ;;  %439 = vperm.xlu0 %941, %v325_v10  }
  0x31   :  { %454 = vperm.xlu1 %942, %v328_v11   ;;  %449 = vperm.xlu0 %941, %v327_v12  }
  0x35   :  { %464 = vperm.xlu1 %942, %v330_v13   ;;  %459 = vperm.xlu0 %941, %v329_v14  }
  0x39   :  { %474 = vperm.xlu1 %942, %v332_v15   ;;  %469 = vperm.xlu0 %941, %v331_v16  }
  0x3d   :  { %484 = vperm.xlu1 %942, %v334_v17   ;;  %479 = vperm.xlu0 %941, %v333_v18  }
  0x41   :  { %494 = vperm.xlu1 %942, %v336_v19   ;;  %489 = vperm.xlu0 %941, %v335_v20  }
  0x84   :  { %v350_v21 = vpop.permute.xlu1 %349  ;;  %v340_v22 = vpop.permute.xlu0 %339 }
  0x88   :  { %v355_v23 = vpop.permute.xlu1 %354  ;;  %v345_v24 = vpop.permute.xlu0 %344 }
  0x8c   :  { %v1188_v25 = vpop.permute.xlu1 %364  ;;  %v360_v26 = vpop.permute.xlu0 %359 }
  0x90   :  { %v375_v27 = vpop.permute.xlu1 %374  ;;  %v370_v28 = vpop.permute.xlu0 %369 }
  0x94   :  { %v1190_v29 = vpop.permute.xlu1 %384  ;;  %v1192_v30 = vpop.permute.xlu0 %379 }
  0x98   :  { %v1194_v31 = vpop.permute.xlu1 %394  ;;  %v1196_v32 = vpop.permute.xlu0 %389 }
  0x9c   :  { %v1198_v33 = vpop.permute.xlu1 %404  ;;  %v1200_v34 = vpop.permute.xlu0 %399 }
  0xa0   :  { %v1202_v35 = vpop.permute.xlu1 %414  ;;  %v1204_v36 = vpop.permute.xlu0 %409 }
  0xa4   :  { %v425_v37 = vpop.permute.xlu1 %424  ;;  %v420_v38 = vpop.permute.xlu0 %419 }
  0xa8   :  { %v435_v39 = vpop.permute.xlu1 %434  ;;  %v430_v40 = vpop.permute.xlu0 %429 }
  0xac   :  { %v445_v41 = vpop.permute.xlu1 %444  ;;  %v440_v42 = vpop.permute.xlu0 %439 }
  0xb0   :  { %v455_v43 = vpop.permute.xlu1 %454  ;;  %v450_v44 = vpop.permute.xlu0 %449 }
  0xb4   :  { %v1206_v45 = vpop.permute.xlu1 %464  ;;  %v1208_v46 = vpop.permute.xlu0 %459 }
  0xb8   :  { %v475_v3 = vpop.permute.xlu1 %474  ;;  %v470_v4 = vpop.permute.xlu0 %469 }
  0xe5   :  { %v902_v47 = vpop.f32.mrb[0].mxu0  ;;  %v918_v48 = vpop.f32.mrb[0].mxu1 }
  0xe6   :  { %v178_v49 = vpop.f32.mrb[1].mxu0  ;;  %v242_v50 = vpop.f32.mrb[1].mxu1  ;;  %v499_v53 = vmul.f32 %v902_v47, %v350_v21  ;;  %v515_v54 = vmul.f32 %v918_v48, %v430_v40 }
  0xe7   :  { %v903_v51 = vpop.f32.mrb[2].mxu0  ;;  %v919_v52 = vpop.f32.mrb[2].mxu1  ;;  %v497_v59 = vmul.f32 %v340_v22, %v178_v49  ;;  %v513_v60 = vmul.f32 %v420_v38, %v242_v50 }
  0xe8   :  { %v500_v55 = vmul.f32 %v903_v51, %v355_v23  ;;  %v516_v56 = vmul.f32 %v919_v52, %v435_v39  ;;  %v181_v57 = vpop.f32.mrb[3].mxu0  ;;  %v245_v58 = vpop.f32.mrb[3].mxu1 }
  0xe9   :  { %v498_v61 = vmul.f32 %v345_v24, %v181_v57  ;;  %v514_v62 = vmul.f32 %v425_v37, %v245_v58  ;;  %v485_v37 = vpop.permute.xlu1 %484  ;;  %v480_v38 = vpop.permute.xlu0 %479 }
  0xea   :  { %v785_v63 = vpack.c.bf16 %v500_v55, %v499_v53  ;;  %v825_v0 = vpack.c.bf16 %v516_v56, %v515_v54 }
  0xeb   :  { %v780_v1 = vpack.c.bf16 %v498_v61, %v497_v59  ;;  %v820_v2 = vpack.c.bf16 %v514_v62, %v513_v60 }
  0xec   :  { %857 = vst [vmem:[%s1272_s3 + $0x8] sm:$0xff] %v785_v63   ;;  %865 = vst [vmem:[%s1272_s3 + $0x48] sm:$0xff] %v825_v0  }
  0xed   :  { %781 = vst [vmem:[%s1272_s3] sm:$0xff] %v780_v1   ;;  %864 = vst [vmem:[%s1272_s3 + $0x40] sm:$0xff] %v820_v2   ;;  %v906_v5 = vpop.f32.mrb[4].mxu0  ;;  %v922_v6 = vpop.f32.mrb[4].mxu1 }
  0xee   :  { %v194_v7 = vpop.f32.mrb[5].mxu0  ;;  %v258_v8 = vpop.f32.mrb[5].mxu1  ;;  %v503_v11 = vmul.f32 %v906_v5, %v370_v28  ;;  %v519_v12 = vmul.f32 %v922_v6, %v450_v44 }
  0xef   :  { %v907_v9 = vpop.f32.mrb[6].mxu0  ;;  %v923_v10 = vpop.f32.mrb[6].mxu1  ;;  %v501_v17 = vmul.f32 %v360_v26, %v194_v7  ;;  %v517_v18 = vmul.f32 %v440_v42, %v258_v8 }
  0xf0   :  { %v504_v13 = vmul.f32 %v907_v9, %v375_v27  ;;  %v520_v14 = vmul.f32 %v923_v10, %v455_v43  ;;  %v197_v15 = vpop.f32.mrb[7].mxu0  ;;  %v261_v16 = vpop.f32.mrb[7].mxu1 }
  0xf1   :  { %v502_v19 = vmul.f32 %v1188_v25, %v197_v15  ;;  %v518_v20 = vmul.f32 %v445_v41, %v261_v16  ;;  %v495_v57 = vpop.permute.xlu1 %494 }
  0xf2   :  { %v795_v21 = vpack.c.bf16 %v504_v13, %v503_v11  ;;  %v835_v22 = vpack.c.bf16 %v520_v14, %v519_v12 }
  0xf3   :  { %v790_v23 = vpack.c.bf16 %v502_v19, %v501_v17  ;;  %v830_v24 = vpack.c.bf16 %v518_v20, %v517_v18 }
  0xf4   :  { %859 = vst [vmem:[%s1272_s3 + $0x18] sm:$0xff] %v795_v21   ;;  %867 = vst [vmem:[%s1272_s3 + $0x58] sm:$0xff] %v835_v22  }
  0xf5   :  { %858 = vst [vmem:[%s1272_s3 + $0x10] sm:$0xff] %v790_v23   ;;  %866 = vst [vmem:[%s1272_s3 + $0x50] sm:$0xff] %v830_v24   ;;  %v910_v25 = vpop.f32.mrb[8].mxu0  ;;  %v926_v26 = vpop.f32.mrb[8].mxu1 }
  0xf6   :  { %v210_v27 = vpop.f32.mrb[9].mxu0  ;;  %v274_v28 = vpop.f32.mrb[9].mxu1  ;;  %v507_v41 = vmul.f32 %v910_v25, %v1196_v32  ;;  %v523_v42 = vmul.f32 %v926_v26, %v470_v4 }
  0xf7   :  { %v911_v39 = vpop.f32.mrb[10].mxu0  ;;  %v927_v40 = vpop.f32.mrb[10].mxu1  ;;  %v505_v49 = vmul.f32 %v1192_v30, %v210_v27  ;;  %v521_v50 = vmul.f32 %v1208_v46, %v274_v28 }
  0xf8   :  { %v508_v43 = vmul.f32 %v911_v39, %v1194_v31  ;;  %v524_v44 = vmul.f32 %v927_v40, %v475_v3  ;;  %v213_v47 = vpop.f32.mrb[11].mxu0  ;;  %v277_v48 = vpop.f32.mrb[11].mxu1 }
  0xf9   :  { %v506_v51 = vmul.f32 %v1190_v29, %v213_v47  ;;  %v522_v52 = vmul.f32 %v1206_v45, %v277_v48  ;;  %v490_v32 = vpop.permute.xlu0 %489 }
  0xfa   :  { %v805_v53 = vpack.c.bf16 %v508_v43, %v507_v41  ;;  %v845_v54 = vpack.c.bf16 %v524_v44, %v523_v42 }
  0xfb   :  { %v800_v55 = vpack.c.bf16 %v506_v51, %v505_v49  ;;  %v840_v56 = vpack.c.bf16 %v522_v52, %v521_v50 }
  0xfc   :  { %861 = vst [vmem:[%s1272_s3 + $0x28] sm:$0xff] %v805_v53   ;;  %869 = vst [vmem:[%s1272_s3 + $0x68] sm:$0xff] %v845_v54  }
  0xfd   :  { %860 = vst [vmem:[%s1272_s3 + $0x20] sm:$0xff] %v800_v55   ;;  %868 = vst [vmem:[%s1272_s3 + $0x60] sm:$0xff] %v840_v56   ;;  %v914_v29 = vpop.f32.mrb[12].mxu0  ;;  %v930_v30 = vpop.f32.mrb[12].mxu1 }
  0xfe   :  { %v226_v31 = vpop.f32.mrb[13].mxu0  ;;  %v290_v45 = vpop.f32.mrb[13].mxu1  ;;  %v511_v59 = vmul.f32 %v914_v29, %v1204_v36  ;;  %v527_v60 = vmul.f32 %v930_v30, %v490_v32 }
  0xff   :  { %v915_v46 = vpop.f32.mrb[14].mxu0  ;;  %v931_v58 = vpop.f32.mrb[14].mxu1  ;;  %v509_v1 = vmul.f32 %v1200_v34, %v226_v31  ;;  %v525_v2 = vmul.f32 %v480_v38, %v290_v45 }
 0x100   :  { %v512_v61 = vmul.f32 %v915_v46, %v1202_v35  ;;  %v528_v62 = vmul.f32 %v931_v58, %v495_v57  ;;  %v229_v63 = vpop.f32.mrb[15].mxu0  ;;  %v293_v0 = vpop.f32.mrb[15].mxu1 }
 0x101   :  { %v510_v3 = vmul.f32 %v1198_v33, %v229_v63  ;;  %v526_v4 = vmul.f32 %v485_v37, %v293_v0 }
 0x102   :  { %v815_v5 = vpack.c.bf16 %v512_v61, %v511_v59  ;;  %v855_v6 = vpack.c.bf16 %v528_v62, %v527_v60 }
 0x103   :  { %v810_v7 = vpack.c.bf16 %v510_v3, %v509_v1  ;;  %v850_v8 = vpack.c.bf16 %v526_v4, %v525_v2 }
 0x104   :  { %863 = vst [vmem:[%s1272_s3 + $0x38] sm:$0xff] %v815_v5   ;;  %871 = vst [vmem:[%s1272_s3 + $0x78] sm:$0xff] %v855_v6  }
 0x105   :  { %862 = vst [vmem:[%s1272_s3 + $0x30] sm:$0xff] %v810_v7   ;;  %870 = vst [vmem:[%s1272_s3 + $0x70] sm:$0xff] %v850_v8  }

// kernel: geomgcn_single_channel_forward.3
= control target key start
LH: loop header
LB: loop body
LE: loop exit
PB: predicated region body
PF: predicated region fallthrough
CT: control target
= control target key end

     0   :  { %8 = vsyncpa [#allocation5], 0  ;;  %s2943_s0 = inlined_call_operand.vmem [shape: s8[4,256,256], index: 0, kind: input, shape index: {}]   ;;  %s2944_s1 = inlined_call_operand.vmem [shape: bf16[256,128], index: 1, kind: input, shape index: {}]   ;;  %s2945_s2 = inlined_call_operand.vmem [shape: f32[256,1], index: 2, kind: input, shape index: {}]   ;;  %s2946_s3 = inlined_call_operand.hbm [shape: f32[256,128], index: 3, kind: output, shape index: {}]  }
   0x1   :  { %10 = vsyncpa [#allocation5 + $0x1], 0  ;;  %s2173_s12 = smov 0   ;;  %s2175_s13 = smov 0  }
   0x2   :  { %s2177_s14 = smov 0   ;;  %s2179_s15 = smov 0  }
   0x3   :  { %s2181_s16 = smov 0   ;;  %s2183_s17 = smov 0  }
   0x4 LB: > { %s1669_s18 = sadd.s32 4294967295, %s2144_s17   ;;  %s1670_s19 = sadd.s32 4294967294, %s2144_s17   ;;  %s2144_s17 = sphi %s2183_s17, %s16_s17   ;;  %s2140_s16 = sphi %s2181_s16, %s2973_s16   ;;  %s2136_s15 = sphi %s2179_s15, %s2972_s15   ;;  %s2132_s14 = sphi %s2177_s14, %s2971_s14   ;;  %s2128_s13 = sphi %s2175_s13, %s2970_s13   ;;  %s2124_s12 = sphi %s2173_s12, %s2969_s12  }
   0x5   : > { %s28_s20 = sadd.s32 1, %s2140_s16  ;;  %s37_s21 = sadd.s32 1, %s2132_s14 }
   0x6   : > { %p30_p0 = scmp.ge.s32.totalorder %s28_s20, 2  ;;  %p44_p1 = scmp.ne.s32.totalorder %s2132_s14, %s2128_s13 }
   0x7   : > { %p45_p2 = scmp.eq.s32.totalorder %s2144_s17, 0  ;;  %p126_p3 = scmp.eq.s32.totalorder %s1669_s18, 1 }
   0x8   : > { %s2975_s20 = smov (%p30_p0, %s28_s20), 0  ;;  %p131_p6 = scmp.ne.s32.totalorder %s2128_s13, %s2124_s12 }
   0x9   : > { %p46_p4 = por %p45_p2, %p44_p1  ;;  %p2212_p5 = por %p126_p3, %p44_p1 }
   0xa   : > { %s32_s23 = ssub.s32 %s2140_s16, %s2975_s20  ;;  %p132_p8 = scmp.eq.s32.totalorder %s1670_s19, 1 }
   0xb   : > { %p35_p7 = scmp.eq.s32.totalorder %s32_s23, 0  ;;  %p1673_p10 = scmp.ge.s32.totalorder %s2144_s17, 2 }
   0xc   : > { %p2223_p9 = por %p132_p8, %p131_p6 }
   0xd   : > { %s2221_s24 = scalar_select %p35_p7, %s2132_s14, %s37_s21  }
   0xe   : > { %157 = sbr.rel (%p1673_p10) target bundleno = 41 (0x29), region = 20 }
  0x15   : > { %160 = sbr.rel (!%p46_p4) target bundleno = 41 (0x29), region = 24  ;;  %s162_s26 = sand.u32 (%p46_p4), 1, %s2132_s14  }
  0x16   : > { %s1729_s27 = sshll.u32 (%p46_p4), %s2140_s16, 6  ;;  %s1674_s28 = sshll.u32 (%p46_p4), %s162_s26, 8 }
  0x17   : > { %s2235_s4 = scalar_lea.vmem (%p46_p4), %s2943_s0, %s1729_s27  ;;  %s2240_s5 = scalar_lea.vmem (%p46_p4), [#allocation3], %s1674_s28 }
  0x18   : > { %v183_v0 = vld [vmem:[%s2235_s4] sm:$0xff] (%p46_p4)  ;;  %v185_v1 = vld [vmem:[%s2235_s4 + $0x8] sm:$0xff] (%p46_p4)  ;;  %v187_v2 = vld [vmem:[%s2235_s4 + $0x10] sm:$0xff] (%p46_p4) }
  0x19   : > { %184 = vst [vmem:[%s2240_s5] sm:$0xff] (%p46_p4), %v183_v0  ;;  %186 = vst [vmem:[%s2240_s5 + $0x8] sm:$0xff] (%p46_p4), %v185_v1  ;;  %v189_v3 = vld [vmem:[%s2235_s4 + $0x18] sm:$0xff] (%p46_p4)  ;;  %v191_v4 = vld [vmem:[%s2235_s4 + $0x20] sm:$0xff] (%p46_p4) }
  0x1a   : > { %188 = vst [vmem:[%s2240_s5 + $0x10] sm:$0xff] (%p46_p4), %v187_v2  ;;  %v193_v5 = vld [vmem:[%s2235_s4 + $0x28] sm:$0xff] (%p46_p4)  ;;  %190 = vst [vmem:[%s2240_s5 + $0x18] sm:$0xff] (%p46_p4), %v189_v3  ;;  %v195_v6 = vld [vmem:[%s2235_s4 + $0x30] sm:$0xff] (%p46_p4) }
  0x1b   : > { %192 = vst [vmem:[%s2240_s5 + $0x20] sm:$0xff] (%p46_p4), %v191_v4  ;;  %194 = vst [vmem:[%s2240_s5 + $0x28] sm:$0xff] (%p46_p4), %v193_v5  ;;  %v197_v7 = vld [vmem:[%s2235_s4 + $0x38] sm:$0xff] (%p46_p4)  ;;  %v199_v8 = vld [vmem:[%s2235_s4 + $0x80] sm:$0xff] (%p46_p4) }
  0x1c   : > { %196 = vst [vmem:[%s2240_s5 + $0x30] sm:$0xff] %v195_v6  ;;  %198 = vst [vmem:[%s2240_s5 + $0x38] sm:$0xff] %v197_v7  ;;  %v201_v9 = vld [vmem:[%s2235_s4 + $0x88] sm:$0xff]  ;;  %v203_v10 = vld [vmem:[%s2235_s4 + $0x90] sm:$0xff] }
  0x1d   : > { %200 = vst [vmem:[%s2240_s5 + $0x40] sm:$0xff] %v199_v8  ;;  %v205_v11 = vld [vmem:[%s2235_s4 + $0x98] sm:$0xff]  ;;  %202 = vst [vmem:[%s2240_s5 + $0x48] sm:$0xff] %v201_v9  ;;  %v207_v12 = vld [vmem:[%s2235_s4 + $0xa0] sm:$0xff] }
  0x1e   : > { %204 = vst [vmem:[%s2240_s5 + $0x50] sm:$0xff] %v203_v10  ;;  %206 = vst [vmem:[%s2240_s5 + $0x58] sm:$0xff] %v205_v11  ;;  %v209_v13 = vld [vmem:[%s2235_s4 + $0xa8] sm:$0xff]  ;;  %v211_v14 = vld [vmem:[%s2235_s4 + $0xb0] sm:$0xff] }
  0x1f   : > { %208 = vst [vmem:[%s2240_s5 + $0x60] sm:$0xff] %v207_v12  ;;  %210 = vst [vmem:[%s2240_s5 + $0x68] sm:$0xff] %v209_v13  ;;  %v213_v15 = vld [vmem:[%s2235_s4 + $0xb8] sm:$0xff]  ;;  %v215_v16 = vld [vmem:[%s2235_s4 + $0x100] sm:$0xff] }
  0x20   : > { %212 = vst [vmem:[%s2240_s5 + $0x70] sm:$0xff] %v211_v14  ;;  %v217_v17 = vld [vmem:[%s2235_s4 + $0x108] sm:$0xff]  ;;  %214 = vst [vmem:[%s2240_s5 + $0x78] sm:$0xff] %v213_v15  ;;  %v219_v18 = vld [vmem:[%s2235_s4 + $0x110] sm:$0xff] }
  0x21   : > { %216 = vst [vmem:[%s2240_s5 + $0x80] sm:$0xff] %v215_v16  ;;  %218 = vst [vmem:[%s2240_s5 + $0x88] sm:$0xff] %v217_v17  ;;  %v221_v19 = vld [vmem:[%s2235_s4 + $0x118] sm:$0xff]  ;;  %v223_v20 = vld [vmem:[%s2235_s4 + $0x120] sm:$0xff] }
  0x22   : > { %220 = vst [vmem:[%s2240_s5 + $0x90] sm:$0xff] %v219_v18  ;;  %222 = vst [vmem:[%s2240_s5 + $0x98] sm:$0xff] %v221_v19  ;;  %v225_v21 = vld [vmem:[%s2235_s4 + $0x128] sm:$0xff]  ;;  %v227_v22 = vld [vmem:[%s2235_s4 + $0x130] sm:$0xff] }
  0x23   : > { %224 = vst [vmem:[%s2240_s5 + $0xa0] sm:$0xff] %v223_v20  ;;  %v229_v23 = vld [vmem:[%s2235_s4 + $0x138] sm:$0xff]  ;;  %226 = vst [vmem:[%s2240_s5 + $0xa8] sm:$0xff] %v225_v21  ;;  %v231_v24 = vld [vmem:[%s2235_s4 + $0x180] sm:$0xff] }
  0x24   : > { %228 = vst [vmem:[%s2240_s5 + $0xb0] sm:$0xff] %v227_v22  ;;  %230 = vst [vmem:[%s2240_s5 + $0xb8] sm:$0xff] %v229_v23  ;;  %v233_v25 = vld [vmem:[%s2235_s4 + $0x188] sm:$0xff]  ;;  %v235_v26 = vld [vmem:[%s2235_s4 + $0x190] sm:$0xff] }
  0x25   : > { %232 = vst [vmem:[%s2240_s5 + $0xc0] sm:$0xff] %v231_v24  ;;  %234 = vst [vmem:[%s2240_s5 + $0xc8] sm:$0xff] %v233_v25  ;;  %v237_v27 = vld [vmem:[%s2235_s4 + $0x198] sm:$0xff]  ;;  %v239_v28 = vld [vmem:[%s2235_s4 + $0x1a0] sm:$0xff] }
  0x26   : > { %236 = vst [vmem:[%s2240_s5 + $0xd0] sm:$0xff] %v235_v26  ;;  %v241_v29 = vld [vmem:[%s2235_s4 + $0x1a8] sm:$0xff]  ;;  %238 = vst [vmem:[%s2240_s5 + $0xd8] sm:$0xff] %v237_v27  ;;  %v243_v30 = vld [vmem:[%s2235_s4 + $0x1b0] sm:$0xff] }
  0x27   : > { %240 = vst [vmem:[%s2240_s5 + $0xe0] sm:$0xff] %v239_v28  ;;  %242 = vst [vmem:[%s2240_s5 + $0xe8] sm:$0xff] %v241_v29  ;;  %v245_v31 = vld [vmem:[%s2235_s4 + $0x1b8] sm:$0xff] }
  0x28   : > { %244 = vst [vmem:[%s2240_s5 + $0xf0] sm:$0xff] %v243_v30  ;;  %246 = vst [vmem:[%s2240_s5 + $0xf8] sm:$0xff] %v245_v31 }
  0x29 PF: > { %p1678_p11 = scmp.ge.s32.totalorder %s2144_s17, 1  ;;  %p260_p12 = scmp.lt.s32.totalorder %s2144_s17, 3 }
  0x2b   : > { %p261_p13 = pnand %p1678_p11, %p260_p12 }
  0x2d   : > { %264 = sbr.rel (%p261_p13) target bundleno = 702 (0x2be), region = 51 }
  0x34   : > { %v2308_v32 = vld [vmem:[%s2944_s1 + $0x40] sm:$0xff]   ;;  %v2313_v33 = vld [vmem:[%s2944_s1 + $0x48] sm:$0xff]   ;;  %s2146_s10 = smov 96   ;;  %v2337_v36 = vld [vmem:[%s2944_s1 + $0x50] sm:$0xff]   ;;  %s2347_s29 = sand.u32 1, %s2128_s13   ;;  %v2149_v29 = vmov 0  }
  0x35   : > { %626 = vrot.lane.b32.xlu0 %v2308_v32, %s2146_s10  ;;  %v2320_v34 = vld [vmem:[%s2944_s1] sm:$0xff]   ;;  %1731 = vmatprep.subr.bf16.mxu0 %v2308_v32  ;;  %v2328_v35 = vld [vmem:[%s2944_s1 + $0x8] sm:$0xff]   ;;  %v2344_v37 = vld [vmem:[%s2944_s1 + $0x10] sm:$0xff]   ;;  %s1679_s5 = sshll.u32 %s2347_s29, 8  ;;  %s2147_s11 = smov 64   ;;  %vm1303_vm0 = vcmask 261120  }
  0x36   : > { %628 = vrot.lane.b32.xlu1 %v2313_v33, %s2146_s10  ;;  %1732 = vmatpush3.bf16.msra.mxu0 %v2320_v34  ;;  %v2356_v38 = vld [vmem:[%s2944_s1 + $0x58] sm:$0xff]   ;;  %v2373_v40 = vld [vmem:[%s2944_s1 + $0x60] sm:$0xff]   ;;  %s2383_s19 = scalar_lea.vmem [#allocation3], %s1679_s5  ;;  %v2392_v44 = vld [vmem:[%s2944_s1 + $0x68] sm:$0xff]   ;;  %s2148_s18 = smov 32   ;;  %vm1320_vm1 = vcmask 523264  }
  0x37   : > { %1733 = vmatprep.subr.bf16.mxu0 %v2313_v33  ;;  %v2364_v39 = vld [vmem:[%s2944_s1 + $0x18] sm:$0xff]   ;;  %v2380_v41 = vld [vmem:[%s2944_s1 + $0x20] sm:$0xff]   ;;  %v337_v42 = vld [vmem:[%s2383_s19 + $0x8] sm:$0xff]  ;;  %s1681_s21 = sshll.u32 %s2136_s15, 4  ;;  %2048 = vset.pattern.permute.xlu1 %v2149_v29  ;;  %vm1337_vm2 = vcmask 785408   ;;  %s1730_s30 = sshll.u32 %s2136_s15, 11 }
  0x38   : > { %v345_v43 = vunpack.c.l.s8.bf16 %v337_v42  ;;  %v2399_v45 = vld [vmem:[%s2944_s1 + $0x28] sm:$0xff]   ;;  %v2412_v48 = vld [vmem:[%s2944_s1 + $0x70] sm:$0xff]   ;;  %v2428_v50 = vld [vmem:[%s2944_s1 + $0x78] sm:$0xff]   ;;  %v347_v54 = vunpack.c.h.s8.bf16 %v337_v42  ;;  %p309_p0 = scmp.lt.s32.totalorder %s1681_s21, 31  ;;  %2049 = vset.pattern.permute.xlu0 %v2149_v29  ;;  %s2891_s7 = scalar_lea.hbm %s2946_s3, %s1730_s30 }
  0x39   : > { %610 = vrot.lane.b32.xlu0 %v2320_v34, %s2146_s10  ;;  %v2403_v46 = vld [vmem:[%s2383_s19 + $0x48] sm:$0xff]  ;;  %v2419_v49 = vld [vmem:[%s2944_s1 + $0x30] sm:$0xff]   ;;  %v2435_v51 = vld [vmem:[%s2944_s1 + $0x38] sm:$0xff]   ;;  %s1550_s8 = scalar_lea.sflag [#allocation5], %s2347_s29  ;;  %s2150_s9 = smov [#allocation4]  }
  0x3a   : > { %612 = vrot.lane.b32.xlu1 %v2328_v35, %s2146_s10  ;;  %1734 = vmatpush3.bf16.msra.mxu0 %v2328_v35  ;;  %v595_v47 = vunpack.c.l.s8.bf16 %v2403_v46  ;;  %v336_v52 = vld [vmem:[%s2383_s19] sm:$0xff]  ;;  %v339_v55 = vld [vmem:[%s2383_s19 + $0x18] sm:$0xff]  ;;  %v338_v58 = vld [vmem:[%s2383_s19 + $0x10] sm:$0xff]  ;;  %s2977_s21 = smov (!%p309_p0, %s1681_s21), 31 }
  0x3b   : > { %1735 = vmatprep.subr.bf16.mxu0 %v2337_v36  ;;  %520 = vmatprep.mubr.bf16.mxu0 %v345_v43  ;;  %v344_v53 = vunpack.c.l.s8.bf16 %v336_v52  ;;  %v346_v56 = vunpack.c.h.s8.bf16 %v336_v52  ;;  %v349_v57 = vunpack.c.l.s8.bf16 %v339_v55  ;;  %v348_v59 = vunpack.c.l.s8.bf16 %v338_v58  ;;  %v341_v61 = vld [vmem:[%s2383_s19 + $0x28] sm:$0xff]  ;;  %v340_v0 = vld [vmem:[%s2383_s19 + $0x20] sm:$0xff]  ;;  %v343_v3 = vld [vmem:[%s2383_s19 + $0x38] sm:$0xff]  ;;  %s1682_s23 = sshll.u32 %s2977_s21, 3 }
  0x3c   : > { %690 = vmatprep.mubr.bf16.mxu1 %v595_v47  ;;  %v351_v60 = vunpack.c.h.s8.bf16 %v339_v55  ;;  %v350_v62 = vunpack.c.h.s8.bf16 %v338_v58  ;;  %v353_v63 = vunpack.c.l.s8.bf16 %v341_v61  ;;  %v352_v1 = vunpack.c.l.s8.bf16 %v340_v0  ;;  %v342_v6 = vld [vmem:[%s2383_s19 + $0x30] sm:$0xff]  ;;  %v2504_v9 = vld [vmem:[%s2383_s19 + $0x88] sm:$0xff]  ;;  %v1699_v28 = vld [vmem:[%s2383_s19 + $0x40] sm:$0xff]  ;;  %s2525_s28 = scalar_lea.vmem %s2945_s2, %s1682_s23 }
  0x3d   : > { %630 = vrot.lane.b32.xlu0 %v2337_v36, %s2146_s10  ;;  %v355_v2 = vunpack.c.h.s8.bf16 %v341_v61  ;;  %v354_v4 = vunpack.c.h.s8.bf16 %v340_v0  ;;  %v357_v5 = vunpack.c.l.s8.bf16 %v343_v3  ;;  %v356_v7 = vunpack.c.l.s8.bf16 %v342_v6  ;;  %v1704_v61 = vld [vmem:[%s2383_s19 + $0x68] sm:$0xff] }
  0x3e   : > { %614 = vrot.lane.b32.xlu1 %v2344_v37, %s2146_s10  ;;  %1736 = vmatpush3.bf16.msra.mxu0 %v2344_v37  ;;  %v359_v8 = vunpack.c.h.s8.bf16 %v343_v3  ;;  %v358_v10 = vunpack.c.h.s8.bf16 %v342_v6  ;;  %v765_v11 = vunpack.c.l.s8.bf16 %v2504_v9  ;;  %v594_v31 = vunpack.c.l.s8.bf16 %v1699_v28  ;;  %v1416_v3 = vld [vmem:[%s2525_s28 + $0x58] sm:$0xff] }
  0x3f   : > { %1737 = vmatprep.subr.bf16.mxu0 %v2356_v38  ;;  %v596_v42 = vunpack.c.h.s8.bf16 %v1699_v28 }
  0x41   : > { %632 = vrot.lane.b32.xlu0 %v2356_v38, %s2146_s10 }
  0x42   : > { %616 = vrot.lane.b32.xlu1 %v2364_v39, %s2146_s10  ;;  %1738 = vmatpush3.bf16.msra.mxu0 %v2364_v39 }
  0x43   : > { %1739 = vmatprep.subr.bf16.mxu0 %v2373_v40 }
  0x45   : > { %634 = vrot.lane.b32.xlu0 %v2373_v40, %s2146_s10 }
  0x46   : > { %618 = vrot.lane.b32.xlu1 %v2380_v41, %s2146_s10  ;;  %1740 = vmatpush3.bf16.msra.mxu0 %v2380_v41 }
  0x47   : > { %1741 = vmatprep.subr.bf16.mxu0 %v2392_v44 }
  0x49   : > { %636 = vrot.lane.b32.xlu0 %v2392_v44, %s2146_s10 }
  0x4a   : > { %620 = vrot.lane.b32.xlu1 %v2399_v45, %s2146_s10  ;;  %1742 = vmatpush3.bf16.msra.mxu0 %v2399_v45 }
  0x4b   : > { %1743 = vmatprep.subr.bf16.mxu0 %v2412_v48 }
  0x4d   : > { %638 = vrot.lane.b32.xlu0 %v2412_v48, %s2146_s10 }
  0x4e   : > { %622 = vrot.lane.b32.xlu1 %v2419_v49, %s2146_s10  ;;  %1744 = vmatpush3.bf16.msra.mxu0 %v2419_v49 }
  0x4f   : > { %1745 = vmatprep.subr.bf16.mxu0 %v2428_v50 }
  0x51   : > { %640 = vrot.lane.b32.xlu0 %v2428_v50, %s2146_s10 }
  0x52   : > { %624 = vrot.lane.b32.xlu1 %v2435_v51, %s2146_s10  ;;  %1746 = vmatpush3.bf16.msra.mxu0 %v2435_v51 }
  0x55   : > { %796 = vrot.lane.b32.xlu0 %v2308_v32, %s2147_s11  ;;  %521 = vmatmul.mubr.bf16.vlgmr.msra.gmra.mrb[0].mxu0 %v344_v53 }
  0x56   : > { %780 = vrot.lane.b32.xlu1 %v2320_v34, %s2147_s11  ;;  %528 = vmatprep.mubr.bf16.mxu0 %v347_v54 }
  0x59   : > { %966 = vrot.lane.b32.xlu0 %v2308_v32, %s2148_s18 }
  0x5a   : > { %950 = vrot.lane.b32.xlu1 %v2320_v34, %s2148_s18  ;;  %v1405_v34 = vld [vmem:[%s2525_s28] sm:$0xff] }
  0x5d   : > { %798 = vrot.lane.b32.xlu0 %v2313_v33, %s2147_s11  ;;  %529 = vmatmul.mubr.bf16.gmra.mrb[4].mxu0 %v346_v56  ;;  %v1412_v56 = vld [vmem:[%s2525_s28 + $0x38] sm:$0xff] }
  0x5e   : > { %782 = vrot.lane.b32.xlu1 %v2328_v35, %s2147_s11  ;;  %536 = vmatprep.mubr.bf16.mxu0 %v349_v57  ;;  %v1415_v57 = vld [vmem:[%s2525_s28 + $0x50] sm:$0xff] }
  0x61   : > { %968 = vrot.lane.b32.xlu0 %v2313_v33, %s2148_s18  ;;  %v597_v33 = vunpack.c.h.s8.bf16 %v2403_v46  ;;  %v1411_v46 = vld [vmem:[%s2525_s28 + $0x30] sm:$0xff] }
  0x62   : > { %952 = vrot.lane.b32.xlu1 %v2328_v35, %s2148_s18  ;;  %v1406_v35 = vld [vmem:[%s2525_s28 + $0x8] sm:$0xff] }
  0x65   : > { %800 = vrot.lane.b32.xlu0 %v2337_v36, %s2147_s11  ;;  %537 = vmatmul.mubr.bf16.gmra.mrb[8].mxu0 %v348_v59 }
  0x66   : > { %784 = vrot.lane.b32.xlu1 %v2344_v37, %s2147_s11  ;;  %544 = vmatprep.mubr.bf16.mxu0 %v351_v60  ;;  %v1414_v60 = vld [vmem:[%s2525_s28 + $0x48] sm:$0xff] }
  0x69   : > { %970 = vrot.lane.b32.xlu0 %v2337_v36, %s2148_s18 }
  0x6a   : > { %954 = vrot.lane.b32.xlu1 %v2344_v37, %s2148_s18 }
  0x6d   : > { %802 = vrot.lane.b32.xlu0 %v2356_v38, %s2147_s11  ;;  %545 = vmatmul.mubr.bf16.gmra.mrb[12].mxu0 %v350_v62  ;;  %v1417_v62 = vld [vmem:[%s2525_s28 + $0x60] sm:$0xff] }
  0x6e   : > { %786 = vrot.lane.b32.xlu1 %v2364_v39, %s2147_s11  ;;  %552 = vmatprep.mubr.bf16.mxu0 %v353_v63 }
  0x71   : > { %972 = vrot.lane.b32.xlu0 %v2356_v38, %s2148_s18  ;;  %v1407_v38 = vld [vmem:[%s2525_s28 + $0x10] sm:$0xff] }
  0x72   : > { %956 = vrot.lane.b32.xlu1 %v2364_v39, %s2148_s18  ;;  %v1702_v39 = vld [vmem:[%s2383_s19 + $0x58] sm:$0xff] }
  0x73   : > { %v601_v55 = vunpack.c.h.s8.bf16 %v1702_v39 }
  0x75   : > { %804 = vrot.lane.b32.xlu0 %v2373_v40, %s2147_s11  ;;  %553 = vmatmul.mubr.bf16.gmra.mrb[16].mxu0 %v352_v1 }
  0x76   : > { %788 = vrot.lane.b32.xlu1 %v2380_v41, %s2147_s11  ;;  %560 = vmatprep.mubr.bf16.mxu0 %v355_v2  ;;  %v603_v2 = vunpack.c.l.s8.bf16 %v1704_v61 }
  0x79   : > { %974 = vrot.lane.b32.xlu0 %v2373_v40, %s2148_s18  ;;  %v1409_v40 = vld [vmem:[%s2525_s28 + $0x20] sm:$0xff] }
  0x7a   : > { %958 = vrot.lane.b32.xlu1 %v2380_v41, %s2148_s18 }
  0x7d   : > { %806 = vrot.lane.b32.xlu0 %v2392_v44, %s2147_s11  ;;  %561 = vmatmul.mubr.bf16.gmra.mrb[20].mxu0 %v354_v4  ;;  %v1419_v4 = vld [vmem:[%s2525_s28 + $0x70] sm:$0xff] }
  0x7e   : > { %790 = vrot.lane.b32.xlu1 %v2399_v45, %s2147_s11  ;;  %568 = vmatprep.mubr.bf16.mxu0 %v357_v5 }
  0x81   : > { %976 = vrot.lane.b32.xlu0 %v2392_v44, %s2148_s18  ;;  %v599_v44 = vunpack.c.l.s8.bf16 %v1702_v39 }
  0x82   : > { %960 = vrot.lane.b32.xlu1 %v2399_v45, %s2148_s18  ;;  %v1408_v45 = vld [vmem:[%s2525_s28 + $0x18] sm:$0xff] }
  0x85   : > { %808 = vrot.lane.b32.xlu0 %v2412_v48, %s2147_s11  ;;  %569 = vmatmul.mubr.bf16.gmra.mrb[24].mxu0 %v356_v7  ;;  %v1703_v7 = vld [vmem:[%s2383_s19 + $0x60] sm:$0xff] }
  0x86   : > { %792 = vrot.lane.b32.xlu1 %v2419_v49, %s2147_s11  ;;  %576 = vmatprep.mubr.bf16.mxu0 %v359_v8  ;;  %v1418_v8 = vld [vmem:[%s2525_s28 + $0x68] sm:$0xff] }
  0x89   : > { %978 = vrot.lane.b32.xlu0 %v2412_v48, %s2148_s18 }
  0x8a   : > { %962 = vrot.lane.b32.xlu1 %v2419_v49, %s2148_s18  ;;  %v1701_v49 = vld [vmem:[%s2383_s19 + $0x50] sm:$0xff] }
  0x8b   : > { %v598_v53 = vunpack.c.l.s8.bf16 %v1701_v49  ;;  %v600_v0 = vunpack.c.h.s8.bf16 %v1701_v49 }
  0x8d   : > { %810 = vrot.lane.b32.xlu0 %v2428_v50, %s2147_s11  ;;  %577 = vmatmul.mubr.bf16.gmra.mrb[28].mxu0 %v358_v10 }
  0x8e   : > { %794 = vrot.lane.b32.xlu1 %v2435_v51, %s2147_s11  ;;  %860 = vmatprep.mubr.bf16.mxu0 %v765_v11  ;;  %v602_v11 = vunpack.c.l.s8.bf16 %v1703_v7 }
  0x91   : > { %980 = vrot.lane.b32.xlu0 %v2428_v50, %s2148_s18  ;;  %v1410_v50 = vld [vmem:[%s2525_s28 + $0x28] sm:$0xff] }
  0x92   : > { %964 = vrot.lane.b32.xlu1 %v2435_v51, %s2148_s18  ;;  %v1413_v51 = vld [vmem:[%s2525_s28 + $0x40] sm:$0xff] }
  0x95   : > { %1428 = vperm.xlu0 %2049, %v1406_v35  }
  0x96   : > { %1423 = vperm.xlu1 %2048, %v1405_v34   ;;  %v1716_v34 = vld [vmem:[%s2383_s19 + $0xc8] sm:$0xff] }
  0x99   : > { %1443 = vperm.xlu0 %2049, %v1409_v40  }
  0x9a   : > { %1433 = vperm.xlu1 %2048, %v1407_v38   ;;  %v935_v38 = vunpack.c.l.s8.bf16 %v1716_v34 }
  0x9d   : > { %1453 = vperm.xlu0 %2049, %v1411_v46  }
  0x9e   : > { %1438 = vperm.xlu1 %2048, %v1408_v45   ;;  %v937_v45 = vunpack.c.h.s8.bf16 %v1716_v34 }
  0xa1   : > { %1463 = vperm.xlu0 %2049, %v1413_v51  }
  0xa2   : > { %1448 = vperm.xlu1 %2048, %v1410_v50  }
  0xa5   : > { %1473 = vperm.xlu0 %2049, %v1415_v57  }
  0xa6   : > { %1458 = vperm.xlu1 %2048, %v1412_v56  }
  0xa7   : > { %v627_v12 = vpop.permute.xlu0 %626 }
  0xa8   : > { %v629_v13 = vpop.permute.xlu1 %628  ;;  %1795 = vmatprep.subr.bf16.mxu1 %v627_v12 }
  0xa9   : > { %1483 = vperm.xlu0 %2049, %v1417_v62  }
  0xaa   : > { %1468 = vperm.xlu1 %2048, %v1414_v60  }
  0xab   : > { %v611_v14 = vpop.permute.xlu0 %610 }
  0xac   : > { %v613_v15 = vpop.permute.xlu1 %612  ;;  %1796 = vmatpush3.bf16.msra.mxu1 %v611_v14  ;;  %v1420_v14 = vld [vmem:[%s2525_s28 + $0x78] sm:$0xff] }
  0xad   : > { %1797 = vmatprep.subr.bf16.mxu1 %v629_v13  ;;  %1493 = vperm.xlu0 %2049, %v1419_v4   ;;  %v605_v13 = vunpack.c.h.s8.bf16 %v1704_v61 }
  0xae   : > { %1478 = vperm.xlu1 %2048, %v1416_v3  }
  0xaf   : > { %v631_v16 = vpop.permute.xlu0 %630 }
  0xb0   : > { %v615_v17 = vpop.permute.xlu1 %614  ;;  %1798 = vmatpush3.bf16.msra.mxu1 %v613_v15 }
  0xb1   : > { %1799 = vmatprep.subr.bf16.mxu1 %v631_v16 }
  0xb2   : > { %1488 = vperm.xlu1 %2048, %v1418_v8  }
  0xb3   : > { %v633_v18 = vpop.permute.xlu0 %632 }
  0xb4   : > { %v617_v19 = vpop.permute.xlu1 %616  ;;  %1800 = vmatpush3.bf16.msra.mxu1 %v615_v17  ;;  %v1706_v17 = vld [vmem:[%s2383_s19 + $0x78] sm:$0xff] }
  0xb5   : > { %1801 = vmatprep.subr.bf16.mxu1 %v633_v18  ;;  %v609_v28 = vunpack.c.h.s8.bf16 %v1706_v17 }
  0xb6   : > { %1498 = vperm.xlu1 %2048, %v1420_v14  }
  0xb7   : > { %v635_v20 = vpop.permute.xlu0 %634 }
  0xb8   : > { %v619_v21 = vpop.permute.xlu1 %618  ;;  %1802 = vmatpush3.bf16.msra.mxu1 %v617_v19  ;;  %v604_v19 = vunpack.c.h.s8.bf16 %v1703_v7 }
  0xb9   : > { %1803 = vmatprep.subr.bf16.mxu1 %v635_v20 }
  0xbb   : > { %v637_v22 = vpop.permute.xlu0 %636 }
  0xbc   : > { %v621_v23 = vpop.permute.xlu1 %620  ;;  %1804 = vmatpush3.bf16.msra.mxu1 %v619_v21  ;;  %v607_v21 = vunpack.c.l.s8.bf16 %v1706_v17 }
  0xbd   : > { %1805 = vmatprep.subr.bf16.mxu1 %v637_v22 }
  0xbf   : > { %v639_v24 = vpop.permute.xlu0 %638 }
  0xc0   : > { %v623_v25 = vpop.permute.xlu1 %622  ;;  %1806 = vmatpush3.bf16.msra.mxu1 %v621_v23 }
  0xc1   : > { %1807 = vmatprep.subr.bf16.mxu1 %v639_v24  ;;  %v1705_v24 = vld [vmem:[%s2383_s19 + $0x70] sm:$0xff] }
  0xc3   : > { %v641_v26 = vpop.permute.xlu0 %640 }
  0xc4   : > { %v625_v27 = vpop.permute.xlu1 %624  ;;  %1808 = vmatpush3.bf16.msra.mxu1 %v623_v25 }
  0xc5   : > { %1809 = vmatprep.subr.bf16.mxu1 %v641_v26  ;;  %v606_v26 = vunpack.c.l.s8.bf16 %v1705_v24 }
  0xc7   : > { %v797_v30 = vpop.permute.xlu0 %796 }
  0xc8   : > { %v781_v32 = vpop.permute.xlu1 %780  ;;  %1810 = vmatpush3.bf16.msra.mxu1 %v625_v27  ;;  %1859 = vmatprep.subr.bf16.mxu0 %v797_v30 }
  0xc9   : > { %1860 = vmatpush3.bf16.msra.mxu0 %v781_v32 }
  0xcb   : > { %v967_v36 = vpop.permute.xlu0 %966  ;;  %691 = vmatmul.mubr.bf16.vlgmr.msra.gmra.mrb[0].mxu1 %v594_v31  ;;  %v1707_v31 = vld [vmem:[%s2383_s19 + $0x80] sm:$0xff] }
  0xcc   : > { %v951_v37 = vpop.permute.xlu1 %950  ;;  %1923 = vmatprep.subr.bf16.mxu1 %v967_v36  ;;  %698 = vmatprep.mubr.bf16.mxu1 %v597_v33  ;;  %v608_v33 = vunpack.c.h.s8.bf16 %v1705_v24  ;;  %v764_v36 = vunpack.c.l.s8.bf16 %v1707_v31 }
  0xcd   : > { %1924 = vmatpush3.bf16.msra.mxu1 %v951_v37  ;;  %v767_v37 = vunpack.c.h.s8.bf16 %v2504_v9  ;;  %v1709_v9 = vld [vmem:[%s2383_s19 + $0x90] sm:$0xff] }
  0xce   : > { %v768_v49 = vunpack.c.l.s8.bf16 %v1709_v9 }
  0xcf   : > { %v799_v41 = vpop.permute.xlu0 %798 }
  0xd0   : > { %v783_v43 = vpop.permute.xlu1 %782  ;;  %1861 = vmatprep.subr.bf16.mxu0 %v799_v41  ;;  %v1715_v41 = vld [vmem:[%s2383_s19 + $0xc0] sm:$0xff] }
  0xd1   : > { %1862 = vmatpush3.bf16.msra.mxu0 %v783_v43  ;;  %v934_v43 = vunpack.c.l.s8.bf16 %v1715_v41 }
  0xd3   : > { %v969_v47 = vpop.permute.xlu0 %968  ;;  %699 = vmatmul.mubr.bf16.gmra.mrb[4].mxu1 %v596_v42  ;;  %v1710_v42 = vld [vmem:[%s2383_s19 + $0x98] sm:$0xff] }
  0xd4   : > { %v953_v48 = vpop.permute.xlu1 %952  ;;  %1925 = vmatprep.subr.bf16.mxu1 %v969_v47  ;;  %706 = vmatprep.mubr.bf16.mxu1 %v599_v44  ;;  %v766_v44 = vunpack.c.h.s8.bf16 %v1707_v31  ;;  %v769_v46 = vunpack.c.l.s8.bf16 %v1710_v42  ;;  %v1718_v47 = vld [vmem:[%s2383_s19 + $0xd8] sm:$0xff]  ;;  %v771_v51 = vunpack.c.h.s8.bf16 %v1710_v42 }
  0xd5   : > { %1926 = vmatpush3.bf16.msra.mxu1 %v953_v48  ;;  %v936_v48 = vunpack.c.h.s8.bf16 %v1715_v41  ;;  %v939_v50 = vunpack.c.l.s8.bf16 %v1718_v47  ;;  %v941_v56 = vunpack.c.h.s8.bf16 %v1718_v47 }
  0xd7   : > { %v801_v52 = vpop.permute.xlu0 %800 }
  0xd8   : > { %v785_v54 = vpop.permute.xlu1 %784  ;;  %1863 = vmatprep.subr.bf16.mxu0 %v801_v52  ;;  %v1717_v52 = vld [vmem:[%s2383_s19 + $0xd0] sm:$0xff] }
  0xd9   : > { %1864 = vmatpush3.bf16.msra.mxu0 %v785_v54  ;;  %v938_v54 = vunpack.c.l.s8.bf16 %v1717_v52  ;;  %v940_v60 = vunpack.c.h.s8.bf16 %v1717_v52 }
  0xdb   : > { %v971_v58 = vpop.permute.xlu0 %970  ;;  %707 = vmatmul.mubr.bf16.gmra.mrb[8].mxu1 %v598_v53  ;;  %v1712_v53 = vld [vmem:[%s2383_s19 + $0xa8] sm:$0xff] }
  0xdc   : > { %v955_v59 = vpop.permute.xlu1 %954  ;;  %1927 = vmatprep.subr.bf16.mxu1 %v971_v58  ;;  %714 = vmatprep.mubr.bf16.mxu1 %v601_v55  ;;  %v770_v55 = vunpack.c.h.s8.bf16 %v1709_v9  ;;  %v773_v57 = vunpack.c.l.s8.bf16 %v1712_v53  ;;  %v1711_v58 = vld [vmem:[%s2383_s19 + $0xa0] sm:$0xff] }
  0xdd   : > { %1928 = vmatpush3.bf16.msra.mxu1 %v955_v59  ;;  %v1720_v59 = vld [vmem:[%s2383_s19 + $0xe8] sm:$0xff]  ;;  %v772_v61 = vunpack.c.l.s8.bf16 %v1711_v58  ;;  %v774_v3 = vunpack.c.h.s8.bf16 %v1711_v58 }
  0xde   : > { %v943_v62 = vunpack.c.l.s8.bf16 %v1720_v59  ;;  %v945_v4 = vunpack.c.h.s8.bf16 %v1720_v59 }
  0xdf   : > { %v803_v63 = vpop.permute.xlu0 %802 }
  0xe0   : > { %v787_v1 = vpop.permute.xlu1 %786  ;;  %1865 = vmatprep.subr.bf16.mxu0 %v803_v63  ;;  %v775_v63 = vunpack.c.h.s8.bf16 %v1712_v53 }
  0xe1   : > { %1866 = vmatpush3.bf16.msra.mxu0 %v787_v1  ;;  %v1714_v1 = vld [vmem:[%s2383_s19 + $0xb8] sm:$0xff] }
  0xe3   : > { %v973_v5 = vpop.permute.xlu0 %972  ;;  %715 = vmatmul.mubr.bf16.gmra.mrb[12].mxu1 %v600_v0  ;;  %v1719_v0 = vld [vmem:[%s2383_s19 + $0xe0] sm:$0xff] }
  0xe4   : > { %v957_v6 = vpop.permute.xlu1 %956  ;;  %1929 = vmatprep.subr.bf16.mxu1 %v973_v5  ;;  %722 = vmatprep.mubr.bf16.mxu1 %v603_v2  ;;  %v942_v2 = vunpack.c.l.s8.bf16 %v1719_v0  ;;  %v777_v5 = vunpack.c.l.s8.bf16 %v1714_v1 }
  0xe5   : > { %1930 = vmatpush3.bf16.msra.mxu1 %v957_v6 }
  0xe7   : > { %v805_v10 = vpop.permute.xlu0 %804 }
  0xe8   : > { %v789_v12 = vpop.permute.xlu1 %788  ;;  %1867 = vmatprep.subr.bf16.mxu0 %v805_v10 }
  0xe9   : > { %1868 = vmatpush3.bf16.msra.mxu0 %v789_v12  ;;  %v1713_v12 = vld [vmem:[%s2383_s19 + $0xb0] sm:$0xff] }
  0xeb   : > { %v975_v15 = vpop.permute.xlu0 %974  ;;  %723 = vmatmul.mubr.bf16.gmra.mrb[16].mxu1 %v602_v11 }
  0xec   : > { %v959_v16 = vpop.permute.xlu1 %958  ;;  %1931 = vmatprep.subr.bf16.mxu1 %v975_v15  ;;  %730 = vmatprep.mubr.bf16.mxu1 %v605_v13  ;;  %v1722_v13 = vld [vmem:[%s2383_s19 + $0xf8] sm:$0xff]  ;;  %v944_v15 = vunpack.c.h.s8.bf16 %v1719_v0 }
  0xed   : > { %1932 = vmatpush3.bf16.msra.mxu1 %v959_v16  ;;  %v776_v16 = vunpack.c.l.s8.bf16 %v1713_v12  ;;  %v947_v17 = vunpack.c.l.s8.bf16 %v1722_v13 }
  0xef   : > { %v807_v18 = vpop.permute.xlu0 %806 }
  0xf0   : > { %v791_v20 = vpop.permute.xlu1 %790  ;;  %1869 = vmatprep.subr.bf16.mxu0 %v807_v18  ;;  %v779_v18 = vunpack.c.h.s8.bf16 %v1714_v1 }
  0xf1   : > { %1870 = vmatpush3.bf16.msra.mxu0 %v791_v20 }
  0xf3   : > { %v977_v22 = vpop.permute.xlu0 %976  ;;  %731 = vmatmul.mubr.bf16.gmra.mrb[20].mxu1 %v604_v19 }
  0xf4   : > { %v961_v23 = vpop.permute.xlu1 %960  ;;  %1933 = vmatprep.subr.bf16.mxu1 %v977_v22  ;;  %738 = vmatprep.mubr.bf16.mxu1 %v607_v21 }
  0xf5   : > { %1934 = vmatpush3.bf16.msra.mxu1 %v961_v23  ;;  %v1721_v23 = vld [vmem:[%s2383_s19 + $0xf0] sm:$0xff] }
  0xf7   : > { %v809_v25 = vpop.permute.xlu0 %808 }
  0xf8   : > { %v793_v27 = vpop.permute.xlu1 %792  ;;  %1871 = vmatprep.subr.bf16.mxu0 %v809_v25 }
  0xf9   : > { %1872 = vmatpush3.bf16.msra.mxu0 %v793_v27  ;;  %v778_v27 = vunpack.c.h.s8.bf16 %v1713_v12 }
  0xfb   : > { %v979_v29 = vpop.permute.xlu0 %978  ;;  %739 = vmatmul.mubr.bf16.gmra.mrb[24].mxu1 %v606_v26  ;;  %v946_v26 = vunpack.c.l.s8.bf16 %v1721_v23 }
  0xfc   : > { %v963_v30 = vpop.permute.xlu1 %962  ;;  %1935 = vmatprep.subr.bf16.mxu1 %v979_v29  ;;  %746 = vmatprep.mubr.bf16.mxu1 %v609_v28  ;;  %v949_v28 = vunpack.c.h.s8.bf16 %v1722_v13 }
  0xfd   : > { %1936 = vmatpush3.bf16.msra.mxu1 %v963_v30 }
  0xff   : > { %v811_v32 = vpop.permute.xlu0 %810 }
 0x100   : > { %v795_v35 = vpop.permute.xlu1 %794  ;;  %1873 = vmatprep.subr.bf16.mxu0 %v811_v32 }
 0x101   : > { %1874 = vmatpush3.bf16.msra.mxu0 %v795_v35  ;;  %v948_v35 = vunpack.c.h.s8.bf16 %v1721_v23 }
 0x103   : > { %747 = vmatmul.mubr.bf16.gmra.mrb[28].mxu1 %v608_v33  ;;  %v981_v39 = vpop.permute.xlu0 %980 }
 0x104   : > { %861 = vmatmul.mubr.bf16.vlgmr.msra.gmra.mrb[32].mxu0 %v764_v36  ;;  %v965_v40 = vpop.permute.xlu1 %964  ;;  %1937 = vmatprep.subr.bf16.mxu1 %v981_v39 }
 0x105   : > { %868 = vmatprep.mubr.bf16.mxu0 %v767_v37  ;;  %1938 = vmatpush3.bf16.msra.mxu1 %v965_v40 }
 0x106   : > { %1030 = vmatprep.mubr.bf16.mxu1 %v935_v38 }
 0x10b   : > { %1031 = vmatmul.mubr.bf16.vlgmr.msra.gmra.mrb[32].mxu1 %v934_v43 }
 0x10c   : > { %869 = vmatmul.mubr.bf16.gmra.mrb[36].mxu0 %v766_v44  ;;  %1038 = vmatprep.mubr.bf16.mxu1 %v937_v45 }
 0x10d   : > { %876 = vmatprep.mubr.bf16.mxu0 %v769_v46 }
 0x113   : > { %1039 = vmatmul.mubr.bf16.gmra.mrb[36].mxu1 %v936_v48 }
 0x114   : > { %877 = vmatmul.mubr.bf16.gmra.mrb[40].mxu0 %v768_v49  ;;  %1046 = vmatprep.mubr.bf16.mxu1 %v939_v50 }
 0x115   : > { %884 = vmatprep.mubr.bf16.mxu0 %v771_v51 }
 0x11b   : > { %1047 = vmatmul.mubr.bf16.gmra.mrb[40].mxu1 %v938_v54 }
 0x11c   : > { %885 = vmatmul.mubr.bf16.gmra.mrb[44].mxu0 %v770_v55  ;;  %1054 = vmatprep.mubr.bf16.mxu1 %v941_v56 }
 0x11d   : > { %892 = vmatprep.mubr.bf16.mxu0 %v773_v57 }
 0x123   : > { %1055 = vmatmul.mubr.bf16.gmra.mrb[44].mxu1 %v940_v60 }
 0x124   : > { %893 = vmatmul.mubr.bf16.gmra.mrb[48].mxu0 %v772_v61  ;;  %1062 = vmatprep.mubr.bf16.mxu1 %v943_v62 }
 0x125   : > { %900 = vmatprep.mubr.bf16.mxu0 %v775_v63 }
 0x128   : > { %v1747_v6 = vpop.f32.mrb[0].mxu0 }
 0x129   : > { %v1748_v7 = vpop.f32.mrb[1].mxu0 }
 0x12a   : > { %v2562_v8 = vadd.f32 %v1748_v7, %v1747_v6  ;;  %v1750_v10 = vpop.f32.mrb[2].mxu0 }
 0x12b   : > { %1063 = vmatmul.mubr.bf16.gmra.mrb[48].mxu1 %v942_v2  ;;  %v1751_v11 = vpop.f32.mrb[3].mxu0 }
 0x12c   : > { %901 = vmatmul.mubr.bf16.gmra.mrb[52].mxu0 %v774_v3  ;;  %1070 = vmatprep.mubr.bf16.mxu1 %v945_v4  ;;  %v2566_v14 = vadd.f32 %v1751_v11, %v1750_v10 }
 0x12d   : > { %908 = vmatprep.mubr.bf16.mxu0 %v777_v5 }
 0x130   : > { %v1753_v19 = vpop.f32.mrb[4].mxu0 }
 0x131   : > { %v1754_v20 = vpop.f32.mrb[5].mxu0 }
 0x132   : > { %v2568_v21 = vadd.f32 %v1754_v20, %v1753_v19  ;;  %v1756_v22 = vpop.f32.mrb[6].mxu0 }
 0x133   : > { %1071 = vmatmul.mubr.bf16.gmra.mrb[52].mxu1 %v944_v15  ;;  %v1757_v24 = vpop.f32.mrb[7].mxu0 }
 0x134   : > { %909 = vmatmul.mubr.bf16.gmra.mrb[56].mxu0 %v776_v16  ;;  %1078 = vmatprep.mubr.bf16.mxu1 %v947_v17  ;;  %v2571_v25 = vadd.f32 %v1757_v24, %v1756_v22 }
 0x135   : > { %916 = vmatprep.mubr.bf16.mxu0 %v779_v18 }
 0x138   : > { %v1759_v29 = vpop.f32.mrb[8].mxu0 }
 0x139   : > { %v1760_v30 = vpop.f32.mrb[9].mxu0 }
 0x13a   : > { %v2573_v31 = vadd.f32 %v1760_v30, %v1759_v29  ;;  %v1762_v32 = vpop.f32.mrb[10].mxu0 }
 0x13b   : > { %1079 = vmatmul.mubr.bf16.gmra.mrb[56].mxu1 %v946_v26  ;;  %v1763_v33 = vpop.f32.mrb[11].mxu0 }
 0x13c   : > { %917 = vmatmul.mubr.bf16.gmra.mrb[60].mxu0 %v778_v27  ;;  %1086 = vmatprep.mubr.bf16.mxu1 %v949_v28  ;;  %v2575_v34 = vadd.f32 %v1763_v33, %v1762_v32 }
 0x140   : > { %v1765_v36 = vpop.f32.mrb[12].mxu0 }
 0x141   : > { %v1766_v37 = vpop.f32.mrb[13].mxu0 }
 0x142   : > { %v2577_v38 = vadd.f32 %v1766_v37, %v1765_v36  ;;  %v1768_v39 = vpop.f32.mrb[14].mxu0 }
 0x143   : > { %1087 = vmatmul.mubr.bf16.gmra.mrb[60].mxu1 %v948_v35  ;;  %v1769_v40 = vpop.f32.mrb[15].mxu0 }
 0x144   : > { %v2579_v41 = vadd.f32 %v1769_v40, %v1768_v39 }
 0x148   : > { %v1771_v42 = vpop.f32.mrb[16].mxu0 }
 0x149   : > { %v1772_v43 = vpop.f32.mrb[17].mxu0 }
 0x14a   : > { %v2581_v44 = vadd.f32 %v1772_v43, %v1771_v42  ;;  %v1774_v45 = vpop.f32.mrb[18].mxu0 }
 0x14b   : > { %v1775_v46 = vpop.f32.mrb[19].mxu0 }
 0x14c   : > { %v2583_v9 = vadd.f32 %v1775_v46, %v1774_v45 }
 0x150   : > { %v1777_v47 = vpop.f32.mrb[20].mxu0 }
 0x151   : > { %v1778_v48 = vpop.f32.mrb[21].mxu0 }
 0x152   : > { %v2585_v49 = vadd.f32 %v1778_v48, %v1777_v47  ;;  %v1780_v50 = vpop.f32.mrb[22].mxu0 }
 0x153   : > { %v1781_v51 = vpop.f32.mrb[23].mxu0 }
 0x154   : > { %v2587_v52 = vadd.f32 %v1781_v51, %v1780_v50 }
 0x158   : > { %v1783_v53 = vpop.f32.mrb[24].mxu0 }
 0x159   : > { %v1784_v54 = vpop.f32.mrb[25].mxu0 }
 0x15a   : > { %v2589_v55 = vadd.f32 %v1784_v54, %v1783_v53  ;;  %v1786_v56 = vpop.f32.mrb[26].mxu0 }
 0x15b   : > { %v1787_v57 = vpop.f32.mrb[27].mxu0 }
 0x15c   : > { %v2591_v58 = vadd.f32 %v1787_v57, %v1786_v56 }
 0x15e   : > { %2949 = vst [vmem:[#allocation7_spill] sm:$0xff] %v2591_v58 }
 0x160   : > { %v1789_v59 = vpop.f32.mrb[28].mxu0 }
 0x161   : > { %v1790_v60 = vpop.f32.mrb[29].mxu0 }
 0x162   : > { %v2593_v61 = vadd.f32 %v1790_v60, %v1789_v59  ;;  %v1792_v62 = vpop.f32.mrb[30].mxu0 }
 0x163   : > { %v1793_v63 = vpop.f32.mrb[31].mxu0 }
 0x164   : > { %v2595_v0 = vadd.f32 %v1793_v63, %v1792_v62 }
 0x166   : > { %2950 = vst [vmem:[#allocation8_spill] sm:$0xff] %v2595_v0 }
 0x19e   : > { %v1811_v1 = vpop.f32.mrb[0].mxu1 }
 0x19f   : > { %v1812_v2 = vpop.f32.mrb[1].mxu1 }
 0x1a0   : > { %v1813_v3 = vadd.f32 %v1812_v2, %v1811_v1  ;;  %v1814_v4 = vpop.f32.mrb[2].mxu1 }
 0x1a1   : > { %v1815_v5 = vpop.f32.mrb[3].mxu1 }
 0x1a2   : > { %v1816_v6 = vadd.f32 %v1815_v5, %v1814_v4  ;;  %1127 = vrot.lane.b32.xlu0 %v1813_v3, %s2148_s18 }
 0x1a4   : > { %1129 = vrot.lane.b32.xlu1 %v1816_v6, %s2148_s18 }
 0x1a6   : > { %v1817_v7 = vpop.f32.mrb[4].mxu1 }
 0x1a7   : > { %v1818_v10 = vpop.f32.mrb[5].mxu1 }
 0x1a8   : > { %v1819_v11 = vadd.f32 %v1818_v10, %v1817_v7  ;;  %v1820_v12 = vpop.f32.mrb[6].mxu1 }
 0x1a9   : > { %v1821_v13 = vpop.f32.mrb[7].mxu1 }
 0x1aa   : > { %v1822_v15 = vadd.f32 %v1821_v13, %v1820_v12 }
 0x1ae   : > { %v1823_v16 = vpop.f32.mrb[8].mxu1 }
 0x1af   : > { %v1824_v17 = vpop.f32.mrb[9].mxu1 }
 0x1b0   : > { %v1825_v18 = vadd.f32 %v1824_v17, %v1823_v16  ;;  %v1826_v19 = vpop.f32.mrb[10].mxu1 }
 0x1b1   : > { %v1827_v20 = vpop.f32.mrb[11].mxu1 }
 0x1b2   : > { %v2599_v22 = vadd.f32 %v1827_v20, %v1826_v19 }
 0x1b6   : > { %v1829_v23 = vpop.f32.mrb[12].mxu1 }
 0x1b7   : > { %v1830_v24 = vpop.f32.mrb[13].mxu1 }
 0x1b8   : > { %v2601_v26 = vadd.f32 %v1830_v24, %v1829_v23  ;;  %v1832_v27 = vpop.f32.mrb[14].mxu1 }
 0x1b9   : > { %v1833_v28 = vpop.f32.mrb[15].mxu1 }
 0x1ba   : > { %v2603_v29 = vadd.f32 %v1833_v28, %v1832_v27 }
 0x1be   : > { %v1835_v30 = vpop.f32.mrb[16].mxu1 }
 0x1bf   : > { %v1836_v32 = vpop.f32.mrb[17].mxu1 }
 0x1c0   : > { %v2605_v33 = vadd.f32 %v1836_v32, %v1835_v30  ;;  %v1838_v35 = vpop.f32.mrb[18].mxu1 }
 0x1c1   : > { %v1839_v36 = vpop.f32.mrb[19].mxu1 }
 0x1c2   : > { %v2607_v37 = vadd.f32 %v1839_v36, %v1838_v35 }
 0x1c6   : > { %v1841_v39 = vpop.f32.mrb[20].mxu1 }
 0x1c7   : > { %v1842_v40 = vpop.f32.mrb[21].mxu1 }
 0x1c8   : > { %v2609_v42 = vadd.f32 %v1842_v40, %v1841_v39  ;;  %v1844_v43 = vpop.f32.mrb[22].mxu1 }
 0x1c9   : > { %v1845_v45 = vpop.f32.mrb[23].mxu1 }
 0x1ca   : > { %v2611_v46 = vadd.f32 %v1845_v45, %v1844_v43 }
 0x1ce   : > { %v1847_v47 = vpop.f32.mrb[24].mxu1 }
 0x1cf   : > { %v1848_v48 = vpop.f32.mrb[25].mxu1 }
 0x1d0   : > { %v2613_v50 = vadd.f32 %v1848_v48, %v1847_v47  ;;  %v1850_v51 = vpop.f32.mrb[26].mxu1 }
 0x1d1   : > { %v1851_v53 = vpop.f32.mrb[27].mxu1 }
 0x1d2   : > { %v2615_v54 = vadd.f32 %v1851_v53, %v1850_v51 }
 0x1d6   : > { %v1853_v56 = vpop.f32.mrb[28].mxu1 }
 0x1d7   : > { %v1875_v57 = vpop.f32.mrb[32].mxu0  ;;  %v1854_v59 = vpop.f32.mrb[29].mxu1 }
 0x1d8   : > { %v1876_v60 = vpop.f32.mrb[33].mxu0  ;;  %v2617_v62 = vadd.f32 %v1854_v59, %v1853_v56  ;;  %v1856_v63 = vpop.f32.mrb[30].mxu1 }
 0x1d9   : > { %v1877_v1 = vadd.f32 %v1876_v60, %v1875_v57  ;;  %v1878_v2 = vpop.f32.mrb[34].mxu0  ;;  %v1857_v3 = vpop.f32.mrb[31].mxu1 }
 0x1da   : > { %v1879_v4 = vpop.f32.mrb[35].mxu0  ;;  %v2619_v5 = vadd.f32 %v1857_v3, %v1856_v63 }
 0x1db   : > { %v1880_v6 = vadd.f32 %v1879_v4, %v1878_v2  ;;  %1191 = vrot.lane.b32.xlu0 %v1877_v1, %s2147_s11 }
 0x1dd   : > { %1193 = vrot.lane.b32.xlu1 %v1880_v6, %s2147_s11 }
 0x1de   : > { %v1939_v7 = vpop.f32.mrb[32].mxu1 }
 0x1df   : > { %v1881_v10 = vpop.f32.mrb[36].mxu0  ;;  %1131 = vrot.lane.b32.xlu0 %v1819_v11, %s2148_s18  ;;  %v1940_v12 = vpop.f32.mrb[33].mxu1 }
 0x1e0   : > { %v1882_v13 = vpop.f32.mrb[37].mxu0  ;;  %v2624_v16 = vadd.f32 %v1940_v12, %v1939_v7  ;;  %v1942_v17 = vpop.f32.mrb[34].mxu1 }
 0x1e1   : > { %v1883_v19 = vadd.f32 %v1882_v13, %v1881_v10  ;;  %v1884_v20 = vpop.f32.mrb[38].mxu0  ;;  %1133 = vrot.lane.b32.xlu1 %v1822_v15, %s2148_s18  ;;  %v1943_v23 = vpop.f32.mrb[35].mxu1 }
 0x1e2   : > { %v1885_v24 = vpop.f32.mrb[39].mxu0  ;;  %v2627_v27 = vadd.f32 %v1943_v23, %v1942_v17 }
 0x1e3   : > { %v1886_v28 = vadd.f32 %v1885_v24, %v1884_v20  ;;  %1195 = vrot.lane.b32.xlu0 %v1883_v19, %s2147_s11 }
 0x1e5   : > { %1197 = vrot.lane.b32.xlu1 %v1886_v28, %s2147_s11 }
 0x1e6   : > { %v1945_v30 = vpop.f32.mrb[36].mxu1 }
 0x1e7   : > { %v1887_v11 = vpop.f32.mrb[40].mxu0  ;;  %1135 = vrot.lane.b32.xlu0 %v1825_v18, %s2148_s18  ;;  %v1946_v32 = vpop.f32.mrb[37].mxu1 }
 0x1e8   : > { %v1888_v35 = vpop.f32.mrb[41].mxu0  ;;  %v2632_v36 = vadd.f32 %v1946_v32, %v1945_v30  ;;  %v1948_v39 = vpop.f32.mrb[38].mxu1 }
 0x1e9   : > { %v1889_v40 = vadd.f32 %v1888_v35, %v1887_v11  ;;  %v1890_v15 = vpop.f32.mrb[42].mxu0  ;;  %1137 = vrot.lane.b32.xlu1 %v2599_v22, %s2148_s18  ;;  %v1949_v43 = vpop.f32.mrb[39].mxu1 }
 0x1ea   : > { %v1891_v45 = vpop.f32.mrb[43].mxu0  ;;  %v2636_v47 = vadd.f32 %v1949_v43, %v1948_v39 }
 0x1eb   : > { %v1892_v48 = vadd.f32 %v1891_v45, %v1890_v15  ;;  %1199 = vrot.lane.b32.xlu0 %v1889_v40, %s2147_s11 }
 0x1ed   : > { %1201 = vrot.lane.b32.xlu1 %v1892_v48, %s2147_s11 }
 0x1ee   : > { %v1951_v18 = vpop.f32.mrb[40].mxu1 }
 0x1ef   : > { %v1893_v51 = vpop.f32.mrb[44].mxu0  ;;  %1139 = vrot.lane.b32.xlu0 %v2601_v26, %s2148_s18  ;;  %v1952_v53 = vpop.f32.mrb[41].mxu1 }
 0x1f0   : > { %v1894_v56 = vpop.f32.mrb[45].mxu0  ;;  %v2642_v57 = vadd.f32 %v1952_v53, %v1951_v18  ;;  %v1954_v59 = vpop.f32.mrb[42].mxu1 }
 0x1f1   : > { %v1895_v22 = vadd.f32 %v1894_v56, %v1893_v51  ;;  %v1896_v60 = vpop.f32.mrb[46].mxu0  ;;  %1141 = vrot.lane.b32.xlu1 %v2603_v29, %s2148_s18  ;;  %v1955_v63 = vpop.f32.mrb[43].mxu1 }
 0x1f2   : > { %v1897_v1 = vpop.f32.mrb[47].mxu0  ;;  %v2646_v2 = vadd.f32 %v1955_v63, %v1954_v59 }
 0x1f3   : > { %v1898_v3 = vadd.f32 %v1897_v1, %v1896_v60  ;;  %1203 = vrot.lane.b32.xlu0 %v1895_v22, %s2147_s11 }
 0x1f5   : > { %1205 = vrot.lane.b32.xlu1 %v1898_v3, %s2147_s11 }
 0x1f6   : > { %v1957_v26 = vpop.f32.mrb[44].mxu1 }
 0x1f7   : > { %v1899_v4 = vpop.f32.mrb[48].mxu0  ;;  %1143 = vrot.lane.b32.xlu0 %v2605_v33, %s2148_s18  ;;  %v1958_v6 = vpop.f32.mrb[45].mxu1 }
 0x1f8   : > { %v1900_v7 = vpop.f32.mrb[49].mxu0  ;;  %v2652_v10 = vadd.f32 %v1958_v6, %v1957_v26  ;;  %v1960_v12 = vpop.f32.mrb[46].mxu1 }
 0x1f9   : > { %v1901_v29 = vadd.f32 %v1900_v7, %v1899_v4  ;;  %v1902_v13 = vpop.f32.mrb[50].mxu0  ;;  %1145 = vrot.lane.b32.xlu1 %v2607_v37, %s2148_s18  ;;  %v1961_v17 = vpop.f32.mrb[47].mxu1 }
 0x1fa   : > { %v1903_v19 = vpop.f32.mrb[51].mxu0  ;;  %v2656_v20 = vadd.f32 %v1961_v17, %v1960_v12 }
 0x1fb   : > { %v1904_v23 = vadd.f32 %v1903_v19, %v1902_v13  ;;  %1207 = vrot.lane.b32.xlu0 %v1901_v29, %s2147_s11  ;;  %v2677_v19 = vpop.permute.xlu1 %1423 }
 0x1fd   : > { %1209 = vrot.lane.b32.xlu1 %v1904_v23, %s2147_s11 }
 0x1fe   : > { %v1963_v33 = vpop.f32.mrb[48].mxu1 }
 0x1ff   : > { %v1905_v24 = vpop.f32.mrb[52].mxu0  ;;  %1147 = vrot.lane.b32.xlu0 %v2609_v42, %s2148_s18  ;;  %v1964_v28 = vpop.f32.mrb[49].mxu1 }
 0x200   : > { %v1906_v30 = vpop.f32.mrb[53].mxu0  ;;  %v1965_v11 = vadd.f32 %v1964_v28, %v1963_v33  ;;  %v1966_v32 = vpop.f32.mrb[50].mxu1 }
 0x201   : > { %v1907_v35 = vadd.f32 %v1906_v30, %v1905_v24  ;;  %v1908_v37 = vpop.f32.mrb[54].mxu0  ;;  %1149 = vrot.lane.b32.xlu1 %v2611_v46, %s2148_s18  ;;  %v1967_v39 = vpop.f32.mrb[51].mxu1 }
 0x202   : > { %v1909_v40 = vpop.f32.mrb[55].mxu0  ;;  %v1968_v15 = vadd.f32 %v1967_v39, %v1966_v32  ;;  %v2684_v30 = vpop.permute.xlu1 %1433 }
 0x203   : > { %v1910_v43 = vadd.f32 %v1909_v40, %v1908_v37  ;;  %1211 = vrot.lane.b32.xlu0 %v1907_v35, %s2147_s11  ;;  %v2690_v32 = vpop.permute.xlu0 %1428 }
 0x205   : > { %1213 = vrot.lane.b32.xlu1 %v1910_v43, %s2147_s11 }
 0x206   : > { %v1969_v45 = vpop.f32.mrb[52].mxu1 }
 0x207   : > { %v1911_v48 = vpop.f32.mrb[56].mxu0  ;;  %1151 = vrot.lane.b32.xlu0 %v2613_v50, %s2148_s18  ;;  %v1970_v42 = vpop.f32.mrb[53].mxu1 }
 0x208   : > { %v1912_v18 = vpop.f32.mrb[57].mxu0  ;;  %v1971_v51 = vadd.f32 %v1970_v42, %v1969_v45  ;;  %v1972_v53 = vpop.f32.mrb[54].mxu1 }
 0x209   : > { %v1913_v56 = vadd.f32 %v1912_v18, %v1911_v48  ;;  %v1914_v59 = vpop.f32.mrb[58].mxu0  ;;  %1153 = vrot.lane.b32.xlu1 %v2615_v54, %s2148_s18  ;;  %v1973_v46 = vpop.f32.mrb[55].mxu1 }
 0x20a   : > { %v1915_v22 = vpop.f32.mrb[59].mxu0  ;;  %v1974_v60 = vadd.f32 %v1973_v46, %v1972_v53 }
 0x20b   : > { %v1916_v63 = vadd.f32 %v1915_v22, %v1914_v59  ;;  %1215 = vrot.lane.b32.xlu0 %v1913_v56, %s2147_s11 }
 0x20d   : > { %1217 = vrot.lane.b32.xlu1 %v1916_v63, %s2147_s11 }
 0x20e   : > { %v1975_v1 = vpop.f32.mrb[56].mxu1 }
 0x20f   : > { %v1917_v3 = vpop.f32.mrb[60].mxu0  ;;  %1155 = vrot.lane.b32.xlu0 %v2617_v62, %s2148_s18  ;;  %v1976_v50 = vpop.f32.mrb[57].mxu1 }
 0x210   : > { %v1918_v26 = vpop.f32.mrb[61].mxu0  ;;  %v1977_v4 = vadd.f32 %v1976_v50, %v1975_v1  ;;  %v1978_v6 = vpop.f32.mrb[58].mxu1 }
 0x211   : > { %v1919_v7 = vadd.f32 %v1918_v26, %v1917_v3  ;;  %v1920_v12 = vpop.f32.mrb[62].mxu0  ;;  %1157 = vrot.lane.b32.xlu1 %v2619_v5, %s2148_s18  ;;  %v1979_v54 = vpop.f32.mrb[59].mxu1 }
 0x212   : > { %v1921_v29 = vpop.f32.mrb[63].mxu0  ;;  %v1980_v13 = vadd.f32 %v1979_v54, %v1978_v6 }
 0x213   : > { %v1922_v17 = vadd.f32 %v1921_v29, %v1920_v12  ;;  %1219 = vrot.lane.b32.xlu0 %v1919_v7, %s2147_s11 }
 0x215   : > { %1221 = vrot.lane.b32.xlu1 %v1922_v17, %s2147_s11  ;;  %s2070_s11 = sshll.u32 %s2150_s9, 4  ;;  %s2071_s11 = int_to_ptr.vmem [resolvable:$false] %s2070_s11 }
 0x216   : > { %v1981_v62 = vpop.f32.mrb[60].mxu1  ;;  %s2072_s18 = scalar_lea.vmem %s2071_s11, 4096 }
 0x217   : > { %1255 = vrot.lane.b32.xlu0 %v2624_v16, %s2146_s10  ;;  %v1982_v23 = vpop.f32.mrb[61].mxu1  ;;  %v2694_v16 = vpop.permute.xlu1 %1438 }
 0x218   : > { %v1983_v33 = vadd.f32 %v1982_v23, %v1981_v62  ;;  %v1984_v24 = vpop.f32.mrb[62].mxu1 }
 0x219   : > { %1257 = vrot.lane.b32.xlu1 %v2627_v27, %s2146_s10  ;;  %v1985_v5 = vpop.f32.mrb[63].mxu1  ;;  %v2700_v27 = vpop.permute.xlu0 %1443 }
 0x21a   : > { %v1986_v28 = vadd.f32 %v1985_v5, %v1984_v24 }
 0x21b   : > { %1259 = vrot.lane.b32.xlu0 %v2632_v36, %s2146_s10  ;;  %v2704_v36 = vpop.permute.xlu1 %1448 }
 0x21d   : > { %1261 = vrot.lane.b32.xlu1 %v2636_v47, %s2146_s10  ;;  %v2708_v47 = vpop.permute.xlu0 %1453 }
 0x21f   : > { %1263 = vrot.lane.b32.xlu0 %v2642_v57, %s2146_s10  ;;  %v2711_v57 = vpop.permute.xlu1 %1458 }
 0x221   : > { %1265 = vrot.lane.b32.xlu1 %v2646_v2, %s2146_s10  ;;  %v2715_v2 = vpop.permute.xlu0 %1463 }
 0x223   : > { %1267 = vrot.lane.b32.xlu0 %v2652_v10, %s2146_s10  ;;  %v2718_v10 = vpop.permute.xlu1 %1468 }
 0x225   : > { %1269 = vrot.lane.b32.xlu1 %v2656_v20, %s2146_s10  ;;  %v2721_v20 = vpop.permute.xlu0 %1473 }
 0x227   : > { %1271 = vrot.lane.b32.xlu0 %v1965_v11, %s2146_s10  ;;  %v2724_v11 = vpop.permute.xlu1 %1478 }
 0x229   : > { %1273 = vrot.lane.b32.xlu1 %v1968_v15, %s2146_s10  ;;  %v2726_v35 = vpop.permute.xlu0 %1483 }
 0x22a   : > { %2951 = vst [vmem:[#allocation9_spill] sm:$0xff] %v2726_v35 }
 0x22b   : > { %1275 = vrot.lane.b32.xlu0 %v1971_v51, %s2146_s10  ;;  %v2728_v37 = vpop.permute.xlu1 %1488 }
 0x22c   : > { %2952 = vst [vmem:[#allocation10_spill] sm:$0xff] %v2728_v37 }
 0x22d   : > { %1277 = vrot.lane.b32.xlu1 %v1974_v60, %s2146_s10  ;;  %v2730_v39 = vpop.permute.xlu0 %1493 }
 0x22e   : > { %2953 = vst [vmem:[#allocation11_spill] sm:$0xff] %v2730_v39 }
 0x22f   : > { %1279 = vrot.lane.b32.xlu0 %v1977_v4, %s2146_s10  ;;  %v2732_v40 = vpop.permute.xlu1 %1498 }
 0x230   : > { %2954 = vst [vmem:[#allocation12_spill] sm:$0xff] %v2732_v40 }
 0x231   : > { %1283 = vrot.lane.b32.xlu1 %v1983_v33, %s2146_s10  ;;  %v1128_v15 = vpop.permute.xlu0 %1127 }
 0x232   : > { %v1304_v40 = vsel %vm1303_vm0, %v2562_v8, %v1128_v15 }
 0x233   : > { %1281 = vrot.lane.b32.xlu0 %v1980_v13, %s2146_s10  ;;  %v1130_v43 = vpop.permute.xlu1 %1129 }
 0x234   : > { %v1305_v39 = vsel %vm1303_vm0, %v2566_v14, %v1130_v43 }
 0x237   : > { %1285 = vrot.lane.b32.xlu0 %v1986_v28, %s2146_s10  ;;  %s1680_s10 = sshll.u32 %s2347_s29, 7 }
 0x238   : > { %s2788_s19 = scalar_lea.vmem [#allocation4], %s1680_s10 }
 0x239   : > { %s1563_s4 = sshll.u32 %s2788_s19, 4  ;;  %s2893_s4 = int_to_ptr.vmem [resolvable:$true] %s1563_s4 }
 0x23a   : > { %s2066_s15 = scalar_lea.vmem %s2893_s4, 2048  ;;  %p2073_p4 = scmp.lt.s32.totalorder %s2893_s4, %s2071_s11 }
 0x23b   : > { %p2067_p1 = scmp.ne.s32.totalorder %s2893_s4, %s2066_s15  ;;  %p2074_p6 = scmp.lt.s32.totalorder %s2072_s18, %s2066_s15 }
 0x23d   : > { %p2068_p2 = pnand %p2067_p1, %p2212_p5  ;;  %p2075_p7 = por %p2074_p6, %p2073_p4 }
 0x23f   : > { %p2069_p3 = pneg %p2068_p2 }
 0x241   : > { %p2076_p8 = pnand %p2075_p7, %p2069_p3 }
 0x24d   : > { %v1192_v45 = vpop.permute.xlu0 %1191 }
 0x24e   : > { %v1321_v0 = vsel %vm1320_vm1, %v1304_v40, %v1192_v45 }
 0x24f   : > { %v1194_v48 = vpop.permute.xlu1 %1193 }
 0x251   : > { %v1132_v42 = vpop.permute.xlu0 %1131 }
 0x253   : > { %v1134_v18 = vpop.permute.xlu1 %1133 }
 0x254   : > { %v1307_v14 = vsel %vm1303_vm0, %v2571_v25, %v1134_v18 }
 0x255   : > { %v1196_v51 = vpop.permute.xlu0 %1195 }
 0x257   : > { %v1198_v53 = vpop.permute.xlu1 %1197 }
 0x259   : > { %v1136_v56 = vpop.permute.xlu0 %1135 }
 0x25b   : > { %v1138_v59 = vpop.permute.xlu1 %1137 }
 0x25d   : > { %v1200_v46 = vpop.permute.xlu0 %1199 }
 0x25f   : > { %v1202_v22 = vpop.permute.xlu1 %1201 }
 0x261   : > { %v1140_v60 = vpop.permute.xlu0 %1139 }
 0x263   : > { %v2734_v63 = vpop.permute.xlu1 %1141 }
 0x265   : > { %v1204_v1 = vpop.permute.xlu0 %1203 }
 0x267   : > { %v2736_v3 = vpop.permute.xlu1 %1205 }
 0x269   : > { %v2738_v50 = vpop.permute.xlu0 %1143 }
 0x26b   : > { %v2740_v26 = vpop.permute.xlu1 %1145 }
 0x26d   : > { %v2742_v4 = vpop.permute.xlu0 %1207 }
 0x26f   : > { %v2744_v6 = vpop.permute.xlu1 %1209 }
 0x271   : > { %v2746_v7 = vpop.permute.xlu0 %1147 }
 0x273   : > { %v2748_v12 = vpop.permute.xlu1 %1149 }
 0x275   : > { %v2750_v54 = vpop.permute.xlu0 %1211 }
 0x277   : > { %v2752_v29 = vpop.permute.xlu1 %1213 }
 0x279   : > { %v2754_v13 = vpop.permute.xlu0 %1151 }
 0x27b   : > { %v2756_v17 = vpop.permute.xlu1 %1153 }
 0x27c   : > { %2955 = vst [vmem:[#allocation13_spill] sm:$0xff] %v2756_v17 }
 0x27d   : > { %v2758_v62 = vpop.permute.xlu0 %1215 }
 0x27f   : > { %v2760_v23 = vpop.permute.xlu1 %1217 }
 0x280   : > { %2956 = vst [vmem:[#allocation14_spill] sm:$0xff] %v2760_v23 }
 0x281   : > { %v2762_v33 = vpop.permute.xlu0 %1155 }
 0x283   : > { %v2764_v24 = vpop.permute.xlu1 %1157 }
 0x284   : > { %2957 = vst [vmem:[#allocation15_spill] sm:$0xff] %v2764_v24  ;;  %v1322_v24 = vsel %vm1320_vm1, %v1305_v39, %v1194_v48 }
 0x285   : > { %v2766_v5 = vpop.permute.xlu0 %1219 }
 0x287   : > { %v2768_v28 = vpop.permute.xlu1 %1221 }
 0x288   : > { %2958 = vst [vmem:[#allocation16_spill] sm:$0xff] %v2768_v28  ;;  %v1306_v28 = vsel %vm1303_vm0, %v2568_v21, %v1132_v42  ;;  %v1309_v42 = vsel %vm1303_vm0, %v2575_v34, %v1138_v59 }
 0x289   : > { %v1256_v37 = vpop.permute.xlu0 %1255  ;;  %v1323_v8 = vsel %vm1320_vm1, %v1306_v28, %v1196_v51 }
 0x28a   : > { %v1338_v23 = vsel %vm1337_vm2, %v1321_v0, %v1256_v37  ;;  %v1324_v37 = vsel %vm1320_vm1, %v1307_v14, %v1198_v53 }
 0x28b   : > { %v1501_v58 = vmul.f32 %v2677_v19, %v1338_v23  ;;  %v1258_v17 = vpop.permute.xlu1 %1257 }
 0x28c   : > { %v1339_v35 = vsel %vm1337_vm2, %v1322_v24, %v1258_v17 }
 0x28d   : > { %v1517_v40 = vmax.f32 %v1501_v58, 0.0  ;;  %v1502_v15 = vmul.f32 %v2690_v32, %v1339_v35  ;;  %v1260_v45 = vpop.permute.xlu0 %1259  ;;  %v1308_v32 = vsel %vm1303_vm0, %v2573_v31, %v1136_v56  ;;  %v1310_v56 = vsel %vm1303_vm0, %v2577_v38, %v1140_v60 }
 0x28e   : > { %v1340_v0 = vsel %vm1337_vm2, %v1323_v8, %v1260_v45  ;;  %v1325_v25 = vsel %vm1320_vm1, %v1308_v32, %v1200_v46 }
 0x28f   : > { %1533 = vst [vmem:[%s2788_s19] sm:$0xff] %v1517_v40  ;;  %v1518_v21 = vmax.f32 %v1502_v15, 0.0  ;;  %v1503_v19 = vmul.f32 %v2684_v30, %v1340_v0  ;;  %v1262_v58 = vpop.permute.xlu1 %1261  ;;  %v1326_v30 = vsel %vm1320_vm1, %v1309_v42, %v1202_v22  ;;  %v1311_v22 = vsel %vm1303_vm0, %v2579_v41, %v2734_v63 }
 0x290   : > { %v1341_v35 = vsel %vm1337_vm2, %v1324_v37, %v1262_v58  ;;  %v1328_v38 = vsel %vm1320_vm1, %v1311_v22, %v2736_v3  ;;  %v2959_v58 = vld [vmem:[#allocation9_spill] sm:$0xff] }
 0x291   : > { %1534 = vst [vmem:[%s2788_s19 + $0x8] sm:$0xff] %v1518_v21  ;;  %v1519_v39 = vmax.f32 %v1503_v19, 0.0  ;;  %v1504_v43 = vmul.f32 %v2694_v16, %v1341_v35  ;;  %v1264_v48 = vpop.permute.xlu0 %1263  ;;  %v1327_v16 = vsel %vm1320_vm1, %v1310_v56, %v1204_v1  ;;  %v2960_v35 = vld [vmem:[#allocation13_spill] sm:$0xff]  ;;  %v2966_v56 = vld [vmem:[#allocation8_spill] sm:$0xff] }
 0x292   : > { %v1342_v18 = vsel %vm1337_vm2, %v1325_v25, %v1264_v48  ;;  %v2961_v25 = vld [vmem:[#allocation7_spill] sm:$0xff] }
 0x293   : > { %1535 = vst [vmem:[%s2788_s19 + $0x10] sm:$0xff] %v1519_v39  ;;  %v1520_v31 = vmax.f32 %v1504_v43, 0.0  ;;  %v1505_v51 = vmul.f32 %v2700_v27, %v1342_v18  ;;  %v1266_v53 = vpop.permute.xlu1 %1265  ;;  %v2962_v43 = vld [vmem:[#allocation14_spill] sm:$0xff] }
 0x294   : > { %v1343_v46 = vsel %vm1337_vm2, %v1326_v30, %v1266_v53  ;;  %v2965_v53 = vld [vmem:[#allocation15_spill] sm:$0xff] }
 0x295   : > { %1536 = vst [vmem:[%s2788_s19 + $0x18] sm:$0xff] %v1520_v31  ;;  %v1521_v34 = vmax.f32 %v1505_v51, 0.0  ;;  %v1506_v59 = vmul.f32 %v2704_v36, %v1343_v46  ;;  %v1268_v17 = vpop.permute.xlu0 %1267  ;;  %v1312_v36 = vsel %vm1303_vm0, %v2581_v44, %v2738_v50  ;;  %v2964_v31 = vld [vmem:[#allocation10_spill] sm:$0xff]  ;;  %v1319_v46 = vsel %vm1303_vm0, %v2966_v56, %v2965_v53 }
 0x296   : > { %v1344_v27 = vsel %vm1337_vm2, %v1327_v16, %v1268_v17  ;;  %v1329_v41 = vsel %vm1320_vm1, %v1312_v36, %v2742_v4  ;;  %v2967_v16 = vld [vmem:[#allocation16_spill] sm:$0xff] }
 0x297   : > { %1537 = vst [vmem:[%s2788_s19 + $0x20] sm:$0xff] %v1521_v34  ;;  %v1522_v60 = vmax.f32 %v1506_v59, 0.0  ;;  %v1507_v23 = vmul.f32 %v2708_v47, %v1344_v27  ;;  %v1270_v1 = vpop.permute.xlu1 %1269  ;;  %v1313_v47 = vsel %vm1303_vm0, %v2583_v9, %v2740_v26  ;;  %v1336_v34 = vsel %vm1320_vm1, %v1319_v46, %v2967_v16  ;;  %v2968_v27 = vld [vmem:[#allocation12_spill] sm:$0xff] }
 0x298   : > { %v1345_v24 = vsel %vm1337_vm2, %v1328_v38, %v1270_v1  ;;  %v1330_v44 = vsel %vm1320_vm1, %v1313_v47, %v2744_v6 }
 0x299   : > { %1538 = vst [vmem:[%s2788_s19 + $0x28] sm:$0xff] %v1522_v60  ;;  %v1523_v63 = vmax.f32 %v1507_v23, 0.0  ;;  %v1508_v28 = vmul.f32 %v2711_v57, %v1345_v24  ;;  %v1272_v3 = vpop.permute.xlu0 %1271  ;;  %v1314_v57 = vsel %vm1303_vm0, %v2585_v49, %v2746_v7 }
 0x29a   : > { %v1346_v8 = vsel %vm1337_vm2, %v1329_v41, %v1272_v3  ;;  %v1331_v9 = vsel %vm1320_vm1, %v1314_v57, %v2750_v54 }
 0x29b   : > { %1539 = vst [vmem:[%s2788_s19 + $0x30] sm:$0xff] %v1523_v63  ;;  %v1524_v50 = vmax.f32 %v1508_v28, 0.0  ;;  %v1509_v40 = vmul.f32 %v2715_v2, %v1346_v8  ;;  %v1274_v4 = vpop.permute.xlu1 %1273  ;;  %v1315_v2 = vsel %vm1303_vm0, %v2587_v52, %v2748_v12 }
 0x29c   : > { %v1347_v15 = vsel %vm1337_vm2, %v1330_v44, %v1274_v4  ;;  %v1332_v49 = vsel %vm1320_vm1, %v1315_v2, %v2752_v29 }
 0x29d   : > { %1540 = vst [vmem:[%s2788_s19 + $0x38] sm:$0xff] %v1524_v50  ;;  %v1525_v26 = vmax.f32 %v1509_v40, 0.0  ;;  %v1510_v45 = vmul.f32 %v2718_v10, %v1347_v15  ;;  %v1276_v6 = vpop.permute.xlu0 %1275  ;;  %v1316_v10 = vsel %vm1303_vm0, %v2589_v55, %v2754_v13 }
 0x29e   : > { %v1348_v14 = vsel %vm1337_vm2, %v1331_v9, %v1276_v6  ;;  %v1333_v52 = vsel %vm1320_vm1, %v1316_v10, %v2758_v62 }
 0x29f   : > { %1541 = vst [vmem:[%s2788_s19 + $0x40] sm:$0xff] %v1525_v26  ;;  %v1526_v7 = vmax.f32 %v1510_v45, 0.0  ;;  %v1511_v0 = vmul.f32 %v2721_v20, %v1348_v14  ;;  %v1278_v54 = vpop.permute.xlu1 %1277  ;;  %v1318_v20 = vsel %vm1303_vm0, %v2593_v61, %v2762_v33 }
 0x2a0   : > { %v1349_v37 = vsel %vm1337_vm2, %v1332_v49, %v1278_v54  ;;  %v1335_v55 = vsel %vm1320_vm1, %v1318_v20, %v2766_v5  ;;  %v2963_v5 = vld [vmem:[#allocation11_spill] sm:$0xff] }
 0x2a1   : > { %1542 = vst [vmem:[%s2788_s19 + $0x48] sm:$0xff] %v1526_v7  ;;  %v1527_v12 = vmax.f32 %v1511_v0, 0.0  ;;  %v1512_v21 = vmul.f32 %v2724_v11, %v1349_v37  ;;  %v1280_v29 = vpop.permute.xlu0 %1279  ;;  %v1317_v11 = vsel %vm1303_vm0, %v2961_v25, %v2960_v35 }
 0x2a2   : > { %v1350_v19 = vsel %vm1337_vm2, %v1333_v52, %v1280_v29  ;;  %v1334_v61 = vsel %vm1320_vm1, %v1317_v11, %v2962_v43 }
 0x2a3   : > { %1543 = vst [vmem:[%s2788_s19 + $0x50] sm:$0xff] %v1527_v12  ;;  %v1528_v13 = vmax.f32 %v1512_v21, 0.0  ;;  %v1513_v62 = vmul.f32 %v2959_v58, %v1350_v19  ;;  %v1284_v32 = vpop.permute.xlu1 %1283 }
 0x2a4   : > { %v1352_v39 = vsel %vm1337_vm2, %v1335_v55, %v1284_v32 }
 0x2a5   : > { %1544 = vst [vmem:[%s2788_s19 + $0x58] sm:$0xff] %v1528_v13  ;;  %v1529_v33 = vmax.f32 %v1513_v62, 0.0  ;;  %v1515_v48 = vmul.f32 %v2963_v5, %v1352_v39  ;;  %v1282_v42 = vpop.permute.xlu0 %1281 }
 0x2a6   : > { %v1351_v18 = vsel %vm1337_vm2, %v1334_v61, %v1282_v42 }
 0x2a7   : > { %1545 = vst [vmem:[%s2788_s19 + $0x60] sm:$0xff] %v1529_v33  ;;  %v1531_v30 = vmax.f32 %v1515_v48, 0.0  ;;  %v1514_v51 = vmul.f32 %v2964_v31, %v1351_v18 }
 0x2a9   : > { %1547 = vst [vmem:[%s2788_s19 + $0x70] sm:$0xff] %v1531_v30  ;;  %v1530_v59 = vmax.f32 %v1514_v51, 0.0  ;;  %v1286_v17 = vpop.permute.xlu0 %1285 }
 0x2aa   : > { %v1353_v22 = vsel %vm1337_vm2, %v1336_v34, %v1286_v17 }
 0x2ab   : > { %1546 = vst [vmem:[%s2788_s19 + $0x68] sm:$0xff] %v1530_v59  ;;  %v1516_v38 = vmul.f32 %v2968_v27, %v1353_v22 }
 0x2ad   : > { %v1532_v60 = vmax.f32 %v1516_v38, 0.0 }
 0x2af   : > { %1548 = vst [vmem:[%s2788_s19 + $0x78] sm:$0xff] %v1532_v60 }
 0x2b0   : > { %2079 = shalt.err (!%p2076_p8)
}
 0x2b1   : > { %s2080_s21 = scalar_lea.hbm %s2891_s7, 2048  ;;  %s2084_s27 = scalar_lea.hbm %s2946_s3, 4096 }
 0x2b2   : > { %p2081_p11 = scmp.ne.s32.totalorder %s2891_s7, %s2080_s21  ;;  %p2085_p0 = scmp.lt.u32.totalorder %s2891_s7, %s2946_s3 }
 0x2b3   : > { %p2086_p1 = scmp.lt.u32.totalorder %s2084_s27, %s2080_s21  ;;  %p2088_p3 = scmp.lt.u32.totalorder %s2080_s21, %s2891_s7 }
 0x2b4   : > { %p2082_p12 = pnand %p2081_p11, %p2212_p5 }
 0x2b5   : > { %p2087_p2 = por %p2086_p1, %p2085_p0 }
 0x2b6   : > { %p2083_p13 = pneg %p2082_p12 }
 0x2b7   : > { %p2089_p4 = por %p2088_p3, %p2087_p2 }
 0x2b9   : > { %p2090_p6 = pnand %p2089_p4, %p2083_p13 }
 0x2bb   : > { %2093 = shalt.err (!%p2090_p6)
}
 0x2bc   : > { %s2151_s19 = smov 128   ;;  %s2152_s30 = smov 8  }
 0x2bd   : > { %1987 = dma.vmem_to_hbm [thread:$0]  (%p2212_p5), %s2893_s4, 2048, %s2891_s7, %s1550_s8, %s2151_s19, %s2151_s19, %s2152_s30  }
 0x2be PF: > { %s1578_s5 = sand.u32 1, %s2124_s12   ;;  %p1990_p7 = pnand %p1673_p10, %p2223_p9 }
 0x2bf   : > { %s1579_s6 = scalar_lea.sflag [#allocation5], %s1578_s5 }
 0x2c0   : > { %2119 = dma.done.wait (!%p1990_p7), %s1579_s6, 2048  }
 0x2c1   : > { %2121 = vsyncadd (!%p1990_p7), %s1579_s6, 4294965248  ;;  %s16_s17 = sadd.s32 1, %s2144_s17   ;;  %s2969_s12 = smov %s2128_s13 }
 0x2c2   : > { %p13_p8 = scmp.ge.s32.totalorder %s16_s17, 4   ;;  %s2970_s13 = smov %s2132_s14 }
 0x2c3   : > { %s2971_s14 = smov %s2221_s24  ;;  %s2972_s15 = smov %s2140_s16 }
 0x2c4   : > { %s2973_s16 = smov %s2975_s20  ;;  %15 = sbr.rel (!%p13_p8) target bundleno = 4 (0x4), region = 112 }
 0x2cb   :  { %1584 = vsyncpa [#allocation5], 1 }
 0x2cc   :  { %1586 = vsyncpa [#allocation5 + $0x1], 1 }

</bundles_post_ra>
